<compile_context>
chip_gen: v7x
topology: tpu7x:2x2x1
jax: 0.10.0
libtpu: 0.0.40
codegen_flags: <defaults>
</compile_context>

<pallas_src>
import functools

import jax
import jax.numpy as jnp
from jax import lax
from jax.experimental import pallas as pl
from jax.experimental.pallas import tpu as pltpu


def _round_up(x, m):
    return ((x + m - 1) // m) * m


def _pack_layout(V, E, H):
    """Row offsets of each weight matrix inside the packed bf16 block.
    Every section starts on a 16-row boundary (bf16 sublane packing)."""
    sizes = [("emb", V), ("w_ih_e", E), ("w_hh_e", H),
             ("w_comb", H), ("w_hh_d", H), ("w_out", H)]
    offs, r = {}, 0
    for name, n in sizes:
        offs[name] = r
        r += _round_up(n, 16)
    return offs, r


# ----------------------------- Pallas kernel --------------------------------

def _dae_kernel(tok_ref,   # (S*Bp, 1) int32   time-major, batch-padded tokens
                w_ref,     # (Rw, C)   bf16    packed weights (_pack_layout)
                b_ref,     # (8, C)    f32     packed biases (b_e, b_comb, b_out)
                out_ref,   # (Bp, S*Vp) f32    lane-dense, batch-major logits
                *, S, Bp, H, E, V, Vp, offs):
    F = 4 * H
    bf16 = jnp.bfloat16

    # ---- unpack weights (static slices of the single packed VMEM block) ----
    emb    = w_ref[offs["emb"]:offs["emb"] + V, :E]            # (V, E)
    w_ih_e = w_ref[offs["w_ih_e"]:offs["w_ih_e"] + E, :F]      # (E, 4H)
    w_hh_e = w_ref[offs["w_hh_e"]:offs["w_hh_e"] + H, :F]      # (H, 4H)
    w_comb = w_ref[offs["w_comb"]:offs["w_comb"] + H, :F]      # (H, 4H)
    w_hh_d = w_ref[offs["w_hh_d"]:offs["w_hh_d"] + H, :F]      # (H, 4H)
    w_out  = w_ref[offs["w_out"]:offs["w_out"] + H, :Vp]       # (H, Vp)
    b_e    = b_ref[0:1, :F]                                    # (1, 4H) f32
    b_comb = b_ref[1:2, :F]
    b_out  = b_ref[2:3, :Vp]

    # ---- in-kernel embedding gather: one-hot matmul on the MXU --------------
    tok = tok_ref[...]                                                # (S*Bp, 1)
    col = lax.broadcasted_iota(jnp.int32, (S * Bp, V), 1)
    onehot = jnp.where(col == tok, 1.0, 0.0).astype(bf16)             # (S*Bp, V)
    emb_rows = jnp.dot(onehot, emb, preferred_element_type=jnp.float32)

    # Encoder input projection hoisted out of the recurrence (one matmul,
    # bias folded in).  Stays an SSA value -> no VMEM scratch round-trip.
    xproj = jnp.dot(emb_rows.astype(bf16), w_ih_e,
                    preferred_element_type=jnp.float32) + b_e         # (S*Bp, 4H)

    def lstm_gates(gates, c):
        # PyTorch gate order i, f, g, o.  Two full-vreg EUP pushes replace
        # four sliced transcendentals (sigmoid(x) == 0.5*tanh(x/2) + 0.5).
        sg = 0.5 * jnp.tanh(0.5 * gates) + 0.5
        tg = jnp.tanh(gates)
        i = sg[:, 0 * H:1 * H]
        f = sg[:, 1 * H:2 * H]
        g = tg[:, 2 * H:3 * H]
        o = sg[:, 3 * H:4 * H]
        c_new = f * c + i * g
        h_new = o * jnp.tanh(c_new)
        return h_new, c_new

    h = jnp.zeros((Bp, H), jnp.float32)
    c = jnp.zeros((Bp, H), jnp.float32)

    # ---------------- encoder recurrence (statically unrolled) ---------------
    # Only h @ w_hh (bf16 operands, f32 accumulate) + elementwise on the chain.
    for t in range(S):
        gates = xproj[t * Bp:(t + 1) * Bp, :] + jnp.dot(
            h.astype(bf16), w_hh_e, preferred_element_type=jnp.float32)
        h, c = lstm_gates(gates, c)

    # ---- fused bottleneck ----------------------------------------------------
    # encoder_fc -> dropout(id) -> decoder_fc -> dropout(id) -> decoder-LSTM
    # input projection, collapsed into one affine map (W_comb, b_comb).  The
    # decoder input is identical at every step, so this is hoisted entirely.
    xp_d = jnp.dot(h.astype(bf16), w_comb,
                   preferred_element_type=jnp.float32) + b_comb        # (Bp, 4H)

    # ---------------- decoder recurrence (statically unrolled) ---------------
    h = jnp.zeros((Bp, H), jnp.float32)
    c = jnp.zeros((Bp, H), jnp.float32)
    hs = []
    for t in range(S):
        gates = xp_d + jnp.dot(h.astype(bf16), w_hh_d,
                               preferred_element_type=jnp.float32)
        h, c = lstm_gates(gates, c)
        hs.append(h)

    # ---- hoisted output projection: one (S*Bp, H) x (H, Vp) matmul ----------
    h_all = jnp.concatenate(hs, axis=0).astype(bf16)                   # (S*Bp, H)
    logits = jnp.dot(h_all, w_out,
                     preferred_element_type=jnp.float32) + b_out       # (S*Bp, Vp)

    # ---- lane-dense, 128-aligned stores, already in batch-major order -------
    # Row block t of `logits` is (batch, vocab) at time t; writing it to lane
    # block t of out_ref gives out[b, t*Vp + v] with no intra-vreg transpose.
    for t in range(S):
        out_ref[:, t * Vp:(t + 1) * Vp] = logits[t * Bp:(t + 1) * Bp, :]


# ------------------------------ wrapper --------------------------------------

def pack_params(params):
    """One-time parameter preprocessing (amortized across forward calls):
      * algebraic fusion of encoder_fc -> decoder_fc -> decoder-LSTM input
        projection into (W_comb, b_comb) -- valid because eval-mode dropout is
        identity and there is no nonlinearity between those affine maps,
      * all matmul weights packed into ONE bf16 block and all biases into ONE
        f32 block -> 3 kernel input DMAs instead of 13.
    """
    V, E = params["embedding"].shape
    H = params["w_hh_e"].shape[0]
    F = 4 * H
    Vp = _round_up(V, 128)
    C = _round_up(max(F, Vp), 128)

    w_comb = params["w_enc"] @ params["w_dec"] @ params["w_ih_d"]          # (H, 4H)
    b_comb = (params["b_enc"] @ params["w_dec"] @ params["w_ih_d"]
              + params["b_dec"] @ params["w_ih_d"]
              + params["b_d"])                                             # (1, 4H)

    offs, rows = _pack_layout(V, E, H)
    w_pack = jnp.zeros((rows, C), jnp.float32)
    for name, a in (("emb", params["embedding"]), ("w_ih_e", params["w_ih_e"]),
                    ("w_hh_e", params["w_hh_e"]), ("w_comb", w_comb),
                    ("w_hh_d", params["w_hh_d"]), ("w_out", params["w_out"])):
        w_pack = w_pack.at[offs[name]:offs[name] + a.shape[0],
                           :a.shape[1]].set(a)
    w_pack = w_pack.astype(jnp.bfloat16)

    b_pack = jnp.zeros((8, C), jnp.float32)
    b_pack = b_pack.at[0, :F].set(params["b_e"][0])
    b_pack = b_pack.at[1, :F].set(b_comb[0])
    b_pack = b_pack.at[2, :V].set(params["b_out"][0])

    return {"w_pack": w_pack, "b_pack": b_pack,
            "dims": dict(V=V, E=E, H=H, Vp=Vp, offs=offs)}


def dae_forward(tokens, packed):
    """tokens: (B, S) int32.  Returns logits (B, S, vocab) float32."""
    B, S = tokens.shape
    d = packed["dims"]
    V, E, H, Vp, offs = d["V"], d["E"], d["H"], d["Vp"], d["offs"]
    Bp = max(8, _round_up(B, 8))          # fill f32 sublanes / MXU rows

    # Time-major, batch-padded flat token ids (tiny int32 op; padded batch
    # rows use token 0 and are sliced away below).
    tok = jnp.pad(tokens.T.astype(jnp.int32),
                  ((0, 0), (0, Bp - B))).reshape(S * Bp, 1)

    kernel = functools.partial(_dae_kernel, S=S, Bp=Bp, H=H, E=E, V=V, Vp=Vp,
                               offs=offs)
    out = pl.pallas_call(
        kernel,
        out_shape=jax.ShapeDtypeStruct((Bp, S * Vp), jnp.float32),
        in_specs=[pl.BlockSpec(memory_space=pltpu.MemorySpace.VMEM)] * 3,
        out_specs=pl.BlockSpec(memory_space=pltpu.MemorySpace.VMEM),
    )(tok, packed["w_pack"], packed["b_pack"])

    # (Bp, S, Vp) -> drop batch / vocab padding; no transpose needed.
    return out.reshape(Bp, S, Vp)[:B, :, :V]


# ------------------------- deterministic parameters ---------------------------

def init_params(key, vocab_size, embed_dim, hidden_dim):
    H, E, V = hidden_dim, embed_dim, vocab_size
    ks = jax.random.split(key, 16)

    def unif(k, shape, bound):
        return jax.random.uniform(k, shape, jnp.float32, -bound, bound)

    k_lstm = 1.0 / jnp.sqrt(H)
    emb = jax.random.normal(ks[0], (V, E), jnp.float32)
    emb = emb.at[0].set(0.0)  # padding_idx=0

    params = {
        "embedding": emb,
        # encoder LSTM (weights stored transposed: (in, 4H)); combined biases
        "w_ih_e": unif(ks[1], (E, 4 * H), k_lstm),
        "w_hh_e": unif(ks[2], (H, 4 * H), k_lstm),
        "b_e": unif(ks[3], (1, 4 * H), k_lstm) + unif(ks[4], (1, 4 * H), k_lstm),
        # encoder_fc: H -> H//2
        "w_enc": unif(ks[5], (H, H // 2), 1.0 / jnp.sqrt(H)),
        "b_enc": unif(ks[6], (1, H // 2), 1.0 / jnp.sqrt(H)),
        # decoder_fc: H//2 -> H
        "w_dec": unif(ks[7], (H // 2, H), 1.0 / jnp.sqrt(H // 2)),
        "b_dec": unif(ks[8], (1, H), 1.0 / jnp.sqrt(H // 2)),
        # decoder LSTM (input dim = H)
        "w_ih_d": unif(ks[9], (H, 4 * H), k_lstm),
        "w_hh_d": unif(ks[10], (H, 4 * H), k_lstm),
        "b_d": unif(ks[11], (1, 4 * H), k_lstm) + unif(ks[12], (1, 4 * H), k_lstm),
        # output projection: H -> V
        "w_out": unif(ks[13], (H, V), 1.0 / jnp.sqrt(H)),
        "b_out": unif(ks[14], (1, V), 1.0 / jnp.sqrt(H)),
    }
    return params


# ------------------------------ pure-JAX reference ----------------------------

def dae_reference(tokens, params):
    embedded = jnp.take(params["embedding"], tokens, axis=0)
    B, S, E = embedded.shape
    H = params["w_hh_e"].shape[0]

    def cell(x, h, c, w_ih, w_hh, b):
        gates = x @ w_ih + h @ w_hh + b
        i, f, g, o = jnp.split(gates, 4, axis=-1)
        c = jax.nn.sigmoid(f) * c + jax.nn.sigmoid(i) * jnp.tanh(g)
        h = jax.nn.sigmoid(o) * jnp.tanh(c)
        return h, c

    h = jnp.zeros((B, H)); c = jnp.zeros((B, H))
    for t in range(S):
        h, c = cell(embedded[:, t, :], h, c,
                    params["w_ih_e"], params["w_hh_e"], params["b_e"])
    encoded = h @ params["w_enc"] + params["b_enc"]
    dec_hidden = encoded @ params["w_dec"] + params["b_dec"]

    h = jnp.zeros((B, H)); c = jnp.zeros((B, H))
    outs = []
    for t in range(S):
        h, c = cell(dec_hidden, h, c,
                    params["w_ih_d"], params["w_hh_d"], params["b_d"])
        outs.append(h @ params["w_out"] + params["b_out"])
    return jnp.stack(outs, axis=1)


# ---------------------------------- main --------------------------------------

if __name__ == "__main__":
    VOCAB, EMBED, HIDDEN = 64, 32, 32
    B, S = 2, 8

    key = jax.random.PRNGKey(0)
    k_params, k_tok = jax.random.split(key)
    params = init_params(k_params, VOCAB, EMBED, HIDDEN)
    tokens = jax.random.randint(k_tok, (B, S), 0, VOCAB, dtype=jnp.int32)

    packed = pack_params(params)                 # one-time preprocessing
    logits = jax.block_until_ready(dae_forward(tokens, packed))
    assert logits.shape == (B, S, VOCAB), logits.shape

    ref = dae_reference(tokens, params)
    # bf16 MXU operands (per perf review) vs. pure-f32 reference -> slightly
    # looser tolerance; gate/elementwise math and accumulation remain f32.
    max_err = float(jnp.max(jnp.abs(logits - ref)))
    assert jnp.allclose(logits, ref, atol=2e-2, rtol=2e-2), max_err

    print("KERNEL_OK")
</pallas_src>

<mosaic_0001>
module attributes {stable_mosaic.version = 11 : i64} {
  func.func @_dae_kernel(%arg0: memref<64x1xi32, #tpu.memory_space<vmem>>, %arg1: memref<224x128xbf16, #tpu.memory_space<vmem>>, %arg2: memref<8x128xf32, #tpu.memory_space<vmem>>, %arg3: memref<8x1024xf32, #tpu.memory_space<vmem>>) attributes {dimension_semantics = [], scalar_prefetch = 0 : i64, scratch_operands = 0 : i64, tpu.core_type = #tpu.core_type<tc>} {
    %c0 = arith.constant 0 : index
    %c0_0 = arith.constant 0 : index
    %0 = vector.load %arg1[%c0, %c0_0] : memref<224x128xbf16, #tpu.memory_space<vmem>>, vector<64x32xbf16>
    %c64 = arith.constant 64 : index
    %c0_1 = arith.constant 0 : index
    %1 = vector.load %arg1[%c64, %c0_1] : memref<224x128xbf16, #tpu.memory_space<vmem>>, vector<32x128xbf16>
    %c96 = arith.constant 96 : index
    %c0_2 = arith.constant 0 : index
    %2 = vector.load %arg1[%c96, %c0_2] : memref<224x128xbf16, #tpu.memory_space<vmem>>, vector<32x128xbf16>
    %c128 = arith.constant 128 : index
    %c0_3 = arith.constant 0 : index
    %3 = vector.load %arg1[%c128, %c0_3] : memref<224x128xbf16, #tpu.memory_space<vmem>>, vector<32x128xbf16>
    %c160 = arith.constant 160 : index
    %c0_4 = arith.constant 0 : index
    %4 = vector.load %arg1[%c160, %c0_4] : memref<224x128xbf16, #tpu.memory_space<vmem>>, vector<32x128xbf16>
    %c192 = arith.constant 192 : index
    %c0_5 = arith.constant 0 : index
    %5 = vector.load %arg1[%c192, %c0_5] : memref<224x128xbf16, #tpu.memory_space<vmem>>, vector<32x128xbf16>
    %c0_6 = arith.constant 0 : index
    %c0_7 = arith.constant 0 : index
    %6 = vector.load %arg2[%c0_6, %c0_7] : memref<8x128xf32, #tpu.memory_space<vmem>>, vector<1x128xf32>
    %c1 = arith.constant 1 : index
    %c0_8 = arith.constant 0 : index
    %7 = vector.load %arg2[%c1, %c0_8] : memref<8x128xf32, #tpu.memory_space<vmem>>, vector<1x128xf32>
    %c2 = arith.constant 2 : index
    %c0_9 = arith.constant 0 : index
    %8 = vector.load %arg2[%c2, %c0_9] : memref<8x128xf32, #tpu.memory_space<vmem>>, vector<1x128xf32>
    %c0_10 = arith.constant 0 : index
    %c0_11 = arith.constant 0 : index
    %9 = vector.load %arg0[%c0_10, %c0_11] : memref<64x1xi32, #tpu.memory_space<vmem>>, vector<64x1xi32>
    %10 = tpu.iota {dimensions = array<i32: 1>} : vector<64x64xi32>
    %11 = vector.broadcast %9 : vector<64x1xi32> to vector<64x64xi32>
    %12 = arith.cmpi eq, %10, %11 : vector<64x64xi32>
    %cst = arith.constant 1.000000e+00 : f32
    %cst_12 = arith.constant 0.000000e+00 : f32
    %13 = vector.broadcast %cst : f32 to vector<64x64xf32>
    %14 = vector.broadcast %cst_12 : f32 to vector<64x64xf32>
    %15 = arith.select %12, %13, %14 : vector<64x64xi1>, vector<64x64xf32>
    %16 = arith.truncf %15 : vector<64x64xf32> to vector<64x64xbf16>
    %cst_13 = arith.constant dense<0.000000e+00> : vector<64x32xf32>
    %17 = tpu.matmul %16, %0, %cst_13 {dimension_numbers = #tpu.dot_dimension_numbers<[1], [0], [0], [1], [0, 0, 1, 1], [], []>} : vector<64x64xbf16>, vector<64x32xbf16>, vector<64x32xf32> -> vector<64x32xf32>
    %18 = arith.truncf %17 : vector<64x32xf32> to vector<64x32xbf16>
    %cst_14 = arith.constant dense<0.000000e+00> : vector<64x128xf32>
    %19 = tpu.matmul %18, %1, %cst_14 {dimension_numbers = #tpu.dot_dimension_numbers<[1], [0], [0], [1], [0, 0, 1, 1], [], []>} : vector<64x32xbf16>, vector<32x128xbf16>, vector<64x128xf32> -> vector<64x128xf32>
    %20 = vector.broadcast %6 : vector<1x128xf32> to vector<64x128xf32>
    %21 = arith.addf %19, %20 : vector<64x128xf32>
    %cst_15 = arith.constant 0.000000e+00 : f32
    %22 = vector.broadcast %cst_15 : f32 to vector<8x32xf32>
    %cst_16 = arith.constant 0.000000e+00 : f32
    %23 = vector.broadcast %cst_16 : f32 to vector<8x32xf32>
    %24 = vector.extract_strided_slice %21 {offsets = [0, 0], sizes = [8, 128], strides = [1, 1]} : vector<64x128xf32> to vector<8x128xf32>
    %25 = arith.truncf %22 : vector<8x32xf32> to vector<8x32xbf16>
    %cst_17 = arith.constant dense<0.000000e+00> : vector<8x128xf32>
    %26 = tpu.matmul %25, %2, %cst_17 {dimension_numbers = #tpu.dot_dimension_numbers<[1], [0], [0], [1], [0, 0, 1, 1], [], []>} : vector<8x32xbf16>, vector<32x128xbf16>, vector<8x128xf32> -> vector<8x128xf32>
    %27 = arith.addf %24, %26 : vector<8x128xf32>
    %cst_18 = arith.constant 5.000000e-01 : f32
    %28 = vector.broadcast %cst_18 : f32 to vector<8x128xf32>
    %29 = arith.mulf %28, %27 : vector<8x128xf32>
    %30 = math.tanh %29 : vector<8x128xf32>
    %cst_19 = arith.constant 5.000000e-01 : f32
    %31 = vector.broadcast %cst_19 : f32 to vector<8x128xf32>
    %32 = arith.mulf %31, %30 : vector<8x128xf32>
    %cst_20 = arith.constant 5.000000e-01 : f32
    %33 = vector.broadcast %cst_20 : f32 to vector<8x128xf32>
    %34 = arith.addf %32, %33 : vector<8x128xf32>
    %35 = math.tanh %27 : vector<8x128xf32>
    %36 = vector.extract_strided_slice %34 {offsets = [0, 0], sizes = [8, 32], strides = [1, 1]} : vector<8x128xf32> to vector<8x32xf32>
    %37 = vector.extract_strided_slice %34 {offsets = [0, 32], sizes = [8, 32], strides = [1, 1]} : vector<8x128xf32> to vector<8x32xf32>
    %38 = vector.extract_strided_slice %35 {offsets = [0, 64], sizes = [8, 32], strides = [1, 1]} : vector<8x128xf32> to vector<8x32xf32>
    %39 = vector.extract_strided_slice %34 {offsets = [0, 96], sizes = [8, 32], strides = [1, 1]} : vector<8x128xf32> to vector<8x32xf32>
    %40 = arith.mulf %37, %23 : vector<8x32xf32>
    %41 = arith.mulf %36, %38 : vector<8x32xf32>
    %42 = arith.addf %40, %41 : vector<8x32xf32>
    %43 = math.tanh %42 : vector<8x32xf32>
    %44 = arith.mulf %39, %43 : vector<8x32xf32>
    %45 = vector.extract_strided_slice %21 {offsets = [8, 0], sizes = [8, 128], strides = [1, 1]} : vector<64x128xf32> to vector<8x128xf32>
    %46 = arith.truncf %44 : vector<8x32xf32> to vector<8x32xbf16>
    %cst_21 = arith.constant dense<0.000000e+00> : vector<8x128xf32>
    %47 = tpu.matmul %46, %2, %cst_21 {dimension_numbers = #tpu.dot_dimension_numbers<[1], [0], [0], [1], [0, 0, 1, 1], [], []>} : vector<8x32xbf16>, vector<32x128xbf16>, vector<8x128xf32> -> vector<8x128xf32>
    %48 = arith.addf %45, %47 : vector<8x128xf32>
    %cst_22 = arith.constant 5.000000e-01 : f32
    %49 = vector.broadcast %cst_22 : f32 to vector<8x128xf32>
    %50 = arith.mulf %49, %48 : vector<8x128xf32>
    %51 = math.tanh %50 : vector<8x128xf32>
    %cst_23 = arith.constant 5.000000e-01 : f32
    %52 = vector.broadcast %cst_23 : f32 to vector<8x128xf32>
    %53 = arith.mulf %52, %51 : vector<8x128xf32>
    %cst_24 = arith.constant 5.000000e-01 : f32
    %54 = vector.broadcast %cst_24 : f32 to vector<8x128xf32>
    %55 = arith.addf %53, %54 : vector<8x128xf32>
    %56 = math.tanh %48 : vector<8x128xf32>
    %57 = vector.extract_strided_slice %55 {offsets = [0, 0], sizes = [8, 32], strides = [1, 1]} : vector<8x128xf32> to vector<8x32xf32>
    %58 = vector.extract_strided_slice %55 {offsets = [0, 32], sizes = [8, 32], strides = [1, 1]} : vector<8x128xf32> to vector<8x32xf32>
    %59 = vector.extract_strided_slice %56 {offsets = [0, 64], sizes = [8, 32], strides = [1, 1]} : vector<8x128xf32> to vector<8x32xf32>
    %60 = vector.extract_strided_slice %55 {offsets = [0, 96], sizes = [8, 32], strides = [1, 1]} : vector<8x128xf32> to vector<8x32xf32>
    %61 = arith.mulf %58, %42 : vector<8x32xf32>
    %62 = arith.mulf %57, %59 : vector<8x32xf32>
    %63 = arith.addf %61, %62 : vector<8x32xf32>
    %64 = math.tanh %63 : vector<8x32xf32>
    %65 = arith.mulf %60, %64 : vector<8x32xf32>
    %66 = vector.extract_strided_slice %21 {offsets = [16, 0], sizes = [8, 128], strides = [1, 1]} : vector<64x128xf32> to vector<8x128xf32>
    %67 = arith.truncf %65 : vector<8x32xf32> to vector<8x32xbf16>
    %cst_25 = arith.constant dense<0.000000e+00> : vector<8x128xf32>
    %68 = tpu.matmul %67, %2, %cst_25 {dimension_numbers = #tpu.dot_dimension_numbers<[1], [0], [0], [1], [0, 0, 1, 1], [], []>} : vector<8x32xbf16>, vector<32x128xbf16>, vector<8x128xf32> -> vector<8x128xf32>
    %69 = arith.addf %66, %68 : vector<8x128xf32>
    %cst_26 = arith.constant 5.000000e-01 : f32
    %70 = vector.broadcast %cst_26 : f32 to vector<8x128xf32>
    %71 = arith.mulf %70, %69 : vector<8x128xf32>
    %72 = math.tanh %71 : vector<8x128xf32>
    %cst_27 = arith.constant 5.000000e-01 : f32
    %73 = vector.broadcast %cst_27 : f32 to vector<8x128xf32>
    %74 = arith.mulf %73, %72 : vector<8x128xf32>
    %cst_28 = arith.constant 5.000000e-01 : f32
    %75 = vector.broadcast %cst_28 : f32 to vector<8x128xf32>
    %76 = arith.addf %74, %75 : vector<8x128xf32>
    %77 = math.tanh %69 : vector<8x128xf32>
    %78 = vector.extract_strided_slice %76 {offsets = [0, 0], sizes = [8, 32], strides = [1, 1]} : vector<8x128xf32> to vector<8x32xf32>
    %79 = vector.extract_strided_slice %76 {offsets = [0, 32], sizes = [8, 32], strides = [1, 1]} : vector<8x128xf32> to vector<8x32xf32>
    %80 = vector.extract_strided_slice %77 {offsets = [0, 64], sizes = [8, 32], strides = [1, 1]} : vector<8x128xf32> to vector<8x32xf32>
    %81 = vector.extract_strided_slice %76 {offsets = [0, 96], sizes = [8, 32], strides = [1, 1]} : vector<8x128xf32> to vector<8x32xf32>
    %82 = arith.mulf %79, %63 : vector<8x32xf32>
    %83 = arith.mulf %78, %80 : vector<8x32xf32>
    %84 = arith.addf %82, %83 : vector<8x32xf32>
    %85 = math.tanh %84 : vector<8x32xf32>
    %86 = arith.mulf %81, %85 : vector<8x32xf32>
    %87 = vector.extract_strided_slice %21 {offsets = [24, 0], sizes = [8, 128], strides = [1, 1]} : vector<64x128xf32> to vector<8x128xf32>
    %88 = arith.truncf %86 : vector<8x32xf32> to vector<8x32xbf16>
    %cst_29 = arith.constant dense<0.000000e+00> : vector<8x128xf32>
    %89 = tpu.matmul %88, %2, %cst_29 {dimension_numbers = #tpu.dot_dimension_numbers<[1], [0], [0], [1], [0, 0, 1, 1], [], []>} : vector<8x32xbf16>, vector<32x128xbf16>, vector<8x128xf32> -> vector<8x128xf32>
    %90 = arith.addf %87, %89 : vector<8x128xf32>
    %cst_30 = arith.constant 5.000000e-01 : f32
    %91 = vector.broadcast %cst_30 : f32 to vector<8x128xf32>
    %92 = arith.mulf %91, %90 : vector<8x128xf32>
    %93 = math.tanh %92 : vector<8x128xf32>
    %cst_31 = arith.constant 5.000000e-01 : f32
    %94 = vector.broadcast %cst_31 : f32 to vector<8x128xf32>
    %95 = arith.mulf %94, %93 : vector<8x128xf32>
    %cst_32 = arith.constant 5.000000e-01 : f32
    %96 = vector.broadcast %cst_32 : f32 to vector<8x128xf32>
    %97 = arith.addf %95, %96 : vector<8x128xf32>
    %98 = math.tanh %90 : vector<8x128xf32>
    %99 = vector.extract_strided_slice %97 {offsets = [0, 0], sizes = [8, 32], strides = [1, 1]} : vector<8x128xf32> to vector<8x32xf32>
    %100 = vector.extract_strided_slice %97 {offsets = [0, 32], sizes = [8, 32], strides = [1, 1]} : vector<8x128xf32> to vector<8x32xf32>
    %101 = vector.extract_strided_slice %98 {offsets = [0, 64], sizes = [8, 32], strides = [1, 1]} : vector<8x128xf32> to vector<8x32xf32>
    %102 = vector.extract_strided_slice %97 {offsets = [0, 96], sizes = [8, 32], strides = [1, 1]} : vector<8x128xf32> to vector<8x32xf32>
    %103 = arith.mulf %100, %84 : vector<8x32xf32>
    %104 = arith.mulf %99, %101 : vector<8x32xf32>
    %105 = arith.addf %103, %104 : vector<8x32xf32>
    %106 = math.tanh %105 : vector<8x32xf32>
    %107 = arith.mulf %102, %106 : vector<8x32xf32>
    %108 = vector.extract_strided_slice %21 {offsets = [32, 0], sizes = [8, 128], strides = [1, 1]} : vector<64x128xf32> to vector<8x128xf32>
    %109 = arith.truncf %107 : vector<8x32xf32> to vector<8x32xbf16>
    %cst_33 = arith.constant dense<0.000000e+00> : vector<8x128xf32>
    %110 = tpu.matmul %109, %2, %cst_33 {dimension_numbers = #tpu.dot_dimension_numbers<[1], [0], [0], [1], [0, 0, 1, 1], [], []>} : vector<8x32xbf16>, vector<32x128xbf16>, vector<8x128xf32> -> vector<8x128xf32>
    %111 = arith.addf %108, %110 : vector<8x128xf32>
    %cst_34 = arith.constant 5.000000e-01 : f32
    %112 = vector.broadcast %cst_34 : f32 to vector<8x128xf32>
    %113 = arith.mulf %112, %111 : vector<8x128xf32>
    %114 = math.tanh %113 : vector<8x128xf32>
    %cst_35 = arith.constant 5.000000e-01 : f32
    %115 = vector.broadcast %cst_35 : f32 to vector<8x128xf32>
    %116 = arith.mulf %115, %114 : vector<8x128xf32>
    %cst_36 = arith.constant 5.000000e-01 : f32
    %117 = vector.broadcast %cst_36 : f32 to vector<8x128xf32>
    %118 = arith.addf %116, %117 : vector<8x128xf32>
    %119 = math.tanh %111 : vector<8x128xf32>
    %120 = vector.extract_strided_slice %118 {offsets = [0, 0], sizes = [8, 32], strides = [1, 1]} : vector<8x128xf32> to vector<8x32xf32>
    %121 = vector.extract_strided_slice %118 {offsets = [0, 32], sizes = [8, 32], strides = [1, 1]} : vector<8x128xf32> to vector<8x32xf32>
    %122 = vector.extract_strided_slice %119 {offsets = [0, 64], sizes = [8, 32], strides = [1, 1]} : vector<8x128xf32> to vector<8x32xf32>
    %123 = vector.extract_strided_slice %118 {offsets = [0, 96], sizes = [8, 32], strides = [1, 1]} : vector<8x128xf32> to vector<8x32xf32>
    %124 = arith.mulf %121, %105 : vector<8x32xf32>
    %125 = arith.mulf %120, %122 : vector<8x32xf32>
    %126 = arith.addf %124, %125 : vector<8x32xf32>
    %127 = math.tanh %126 : vector<8x32xf32>
    %128 = arith.mulf %123, %127 : vector<8x32xf32>
    %129 = vector.extract_strided_slice %21 {offsets = [40, 0], sizes = [8, 128], strides = [1, 1]} : vector<64x128xf32> to vector<8x128xf32>
    %130 = arith.truncf %128 : vector<8x32xf32> to vector<8x32xbf16>
    %cst_37 = arith.constant dense<0.000000e+00> : vector<8x128xf32>
    %131 = tpu.matmul %130, %2, %cst_37 {dimension_numbers = #tpu.dot_dimension_numbers<[1], [0], [0], [1], [0, 0, 1, 1], [], []>} : vector<8x32xbf16>, vector<32x128xbf16>, vector<8x128xf32> -> vector<8x128xf32>
    %132 = arith.addf %129, %131 : vector<8x128xf32>
    %cst_38 = arith.constant 5.000000e-01 : f32
    %133 = vector.broadcast %cst_38 : f32 to vector<8x128xf32>
    %134 = arith.mulf %133, %132 : vector<8x128xf32>
    %135 = math.tanh %134 : vector<8x128xf32>
    %cst_39 = arith.constant 5.000000e-01 : f32
    %136 = vector.broadcast %cst_39 : f32 to vector<8x128xf32>
    %137 = arith.mulf %136, %135 : vector<8x128xf32>
    %cst_40 = arith.constant 5.000000e-01 : f32
    %138 = vector.broadcast %cst_40 : f32 to vector<8x128xf32>
    %139 = arith.addf %137, %138 : vector<8x128xf32>
    %140 = math.tanh %132 : vector<8x128xf32>
    %141 = vector.extract_strided_slice %139 {offsets = [0, 0], sizes = [8, 32], strides = [1, 1]} : vector<8x128xf32> to vector<8x32xf32>
    %142 = vector.extract_strided_slice %139 {offsets = [0, 32], sizes = [8, 32], strides = [1, 1]} : vector<8x128xf32> to vector<8x32xf32>
    %143 = vector.extract_strided_slice %140 {offsets = [0, 64], sizes = [8, 32], strides = [1, 1]} : vector<8x128xf32> to vector<8x32xf32>
    %144 = vector.extract_strided_slice %139 {offsets = [0, 96], sizes = [8, 32], strides = [1, 1]} : vector<8x128xf32> to vector<8x32xf32>
    %145 = arith.mulf %142, %126 : vector<8x32xf32>
    %146 = arith.mulf %141, %143 : vector<8x32xf32>
    %147 = arith.addf %145, %146 : vector<8x32xf32>
    %148 = math.tanh %147 : vector<8x32xf32>
    %149 = arith.mulf %144, %148 : vector<8x32xf32>
    %150 = vector.extract_strided_slice %21 {offsets = [48, 0], sizes = [8, 128], strides = [1, 1]} : vector<64x128xf32> to vector<8x128xf32>
    %151 = arith.truncf %149 : vector<8x32xf32> to vector<8x32xbf16>
    %cst_41 = arith.constant dense<0.000000e+00> : vector<8x128xf32>
    %152 = tpu.matmul %151, %2, %cst_41 {dimension_numbers = #tpu.dot_dimension_numbers<[1], [0], [0], [1], [0, 0, 1, 1], [], []>} : vector<8x32xbf16>, vector<32x128xbf16>, vector<8x128xf32> -> vector<8x128xf32>
    %153 = arith.addf %150, %152 : vector<8x128xf32>
    %cst_42 = arith.constant 5.000000e-01 : f32
    %154 = vector.broadcast %cst_42 : f32 to vector<8x128xf32>
    %155 = arith.mulf %154, %153 : vector<8x128xf32>
    %156 = math.tanh %155 : vector<8x128xf32>
    %cst_43 = arith.constant 5.000000e-01 : f32
    %157 = vector.broadcast %cst_43 : f32 to vector<8x128xf32>
    %158 = arith.mulf %157, %156 : vector<8x128xf32>
    %cst_44 = arith.constant 5.000000e-01 : f32
    %159 = vector.broadcast %cst_44 : f32 to vector<8x128xf32>
    %160 = arith.addf %158, %159 : vector<8x128xf32>
    %161 = math.tanh %153 : vector<8x128xf32>
    %162 = vector.extract_strided_slice %160 {offsets = [0, 0], sizes = [8, 32], strides = [1, 1]} : vector<8x128xf32> to vector<8x32xf32>
    %163 = vector.extract_strided_slice %160 {offsets = [0, 32], sizes = [8, 32], strides = [1, 1]} : vector<8x128xf32> to vector<8x32xf32>
    %164 = vector.extract_strided_slice %161 {offsets = [0, 64], sizes = [8, 32], strides = [1, 1]} : vector<8x128xf32> to vector<8x32xf32>
    %165 = vector.extract_strided_slice %160 {offsets = [0, 96], sizes = [8, 32], strides = [1, 1]} : vector<8x128xf32> to vector<8x32xf32>
    %166 = arith.mulf %163, %147 : vector<8x32xf32>
    %167 = arith.mulf %162, %164 : vector<8x32xf32>
    %168 = arith.addf %166, %167 : vector<8x32xf32>
    %169 = math.tanh %168 : vector<8x32xf32>
    %170 = arith.mulf %165, %169 : vector<8x32xf32>
    %171 = vector.extract_strided_slice %21 {offsets = [56, 0], sizes = [8, 128], strides = [1, 1]} : vector<64x128xf32> to vector<8x128xf32>
    %172 = arith.truncf %170 : vector<8x32xf32> to vector<8x32xbf16>
    %cst_45 = arith.constant dense<0.000000e+00> : vector<8x128xf32>
    %173 = tpu.matmul %172, %2, %cst_45 {dimension_numbers = #tpu.dot_dimension_numbers<[1], [0], [0], [1], [0, 0, 1, 1], [], []>} : vector<8x32xbf16>, vector<32x128xbf16>, vector<8x128xf32> -> vector<8x128xf32>
    %174 = arith.addf %171, %173 : vector<8x128xf32>
    %cst_46 = arith.constant 5.000000e-01 : f32
    %175 = vector.broadcast %cst_46 : f32 to vector<8x128xf32>
    %176 = arith.mulf %175, %174 : vector<8x128xf32>
    %177 = math.tanh %176 : vector<8x128xf32>
    %cst_47 = arith.constant 5.000000e-01 : f32
    %178 = vector.broadcast %cst_47 : f32 to vector<8x128xf32>
    %179 = arith.mulf %178, %177 : vector<8x128xf32>
    %cst_48 = arith.constant 5.000000e-01 : f32
    %180 = vector.broadcast %cst_48 : f32 to vector<8x128xf32>
    %181 = arith.addf %179, %180 : vector<8x128xf32>
    %182 = math.tanh %174 : vector<8x128xf32>
    %183 = vector.extract_strided_slice %181 {offsets = [0, 0], sizes = [8, 32], strides = [1, 1]} : vector<8x128xf32> to vector<8x32xf32>
    %184 = vector.extract_strided_slice %181 {offsets = [0, 32], sizes = [8, 32], strides = [1, 1]} : vector<8x128xf32> to vector<8x32xf32>
    %185 = vector.extract_strided_slice %182 {offsets = [0, 64], sizes = [8, 32], strides = [1, 1]} : vector<8x128xf32> to vector<8x32xf32>
    %186 = vector.extract_strided_slice %181 {offsets = [0, 96], sizes = [8, 32], strides = [1, 1]} : vector<8x128xf32> to vector<8x32xf32>
    %187 = arith.mulf %184, %168 : vector<8x32xf32>
    %188 = arith.mulf %183, %185 : vector<8x32xf32>
    %189 = arith.addf %187, %188 : vector<8x32xf32>
    %190 = math.tanh %189 : vector<8x32xf32>
    %191 = arith.mulf %186, %190 : vector<8x32xf32>
    %192 = arith.truncf %191 : vector<8x32xf32> to vector<8x32xbf16>
    %cst_49 = arith.constant dense<0.000000e+00> : vector<8x128xf32>
    %193 = tpu.matmul %192, %3, %cst_49 {dimension_numbers = #tpu.dot_dimension_numbers<[1], [0], [0], [1], [0, 0, 1, 1], [], []>} : vector<8x32xbf16>, vector<32x128xbf16>, vector<8x128xf32> -> vector<8x128xf32>
    %194 = vector.broadcast %7 : vector<1x128xf32> to vector<8x128xf32>
    %195 = arith.addf %193, %194 : vector<8x128xf32>
    %cst_50 = arith.constant 0.000000e+00 : f32
    %196 = vector.broadcast %cst_50 : f32 to vector<8x32xf32>
    %cst_51 = arith.constant 0.000000e+00 : f32
    %197 = vector.broadcast %cst_51 : f32 to vector<8x32xf32>
    %198 = arith.truncf %196 : vector<8x32xf32> to vector<8x32xbf16>
    %cst_52 = arith.constant dense<0.000000e+00> : vector<8x128xf32>
    %199 = tpu.matmul %198, %4, %cst_52 {dimension_numbers = #tpu.dot_dimension_numbers<[1], [0], [0], [1], [0, 0, 1, 1], [], []>} : vector<8x32xbf16>, vector<32x128xbf16>, vector<8x128xf32> -> vector<8x128xf32>
    %200 = arith.addf %195, %199 : vector<8x128xf32>
    %cst_53 = arith.constant 5.000000e-01 : f32
    %201 = vector.broadcast %cst_53 : f32 to vector<8x128xf32>
    %202 = arith.mulf %201, %200 : vector<8x128xf32>
    %203 = math.tanh %202 : vector<8x128xf32>
    %cst_54 = arith.constant 5.000000e-01 : f32
    %204 = vector.broadcast %cst_54 : f32 to vector<8x128xf32>
    %205 = arith.mulf %204, %203 : vector<8x128xf32>
    %cst_55 = arith.constant 5.000000e-01 : f32
    %206 = vector.broadcast %cst_55 : f32 to vector<8x128xf32>
    %207 = arith.addf %205, %206 : vector<8x128xf32>
    %208 = math.tanh %200 : vector<8x128xf32>
    %209 = vector.extract_strided_slice %207 {offsets = [0, 0], sizes = [8, 32], strides = [1, 1]} : vector<8x128xf32> to vector<8x32xf32>
    %210 = vector.extract_strided_slice %207 {offsets = [0, 32], sizes = [8, 32], strides = [1, 1]} : vector<8x128xf32> to vector<8x32xf32>
    %211 = vector.extract_strided_slice %208 {offsets = [0, 64], sizes = [8, 32], strides = [1, 1]} : vector<8x128xf32> to vector<8x32xf32>
    %212 = vector.extract_strided_slice %207 {offsets = [0, 96], sizes = [8, 32], strides = [1, 1]} : vector<8x128xf32> to vector<8x32xf32>
    %213 = arith.mulf %210, %197 : vector<8x32xf32>
    %214 = arith.mulf %209, %211 : vector<8x32xf32>
    %215 = arith.addf %213, %214 : vector<8x32xf32>
    %216 = math.tanh %215 : vector<8x32xf32>
    %217 = arith.mulf %212, %216 : vector<8x32xf32>
    %218 = arith.truncf %217 : vector<8x32xf32> to vector<8x32xbf16>
    %cst_56 = arith.constant dense<0.000000e+00> : vector<8x128xf32>
    %219 = tpu.matmul %218, %4, %cst_56 {dimension_numbers = #tpu.dot_dimension_numbers<[1], [0], [0], [1], [0, 0, 1, 1], [], []>} : vector<8x32xbf16>, vector<32x128xbf16>, vector<8x128xf32> -> vector<8x128xf32>
    %220 = arith.addf %195, %219 : vector<8x128xf32>
    %cst_57 = arith.constant 5.000000e-01 : f32
    %221 = vector.broadcast %cst_57 : f32 to vector<8x128xf32>
    %222 = arith.mulf %221, %220 : vector<8x128xf32>
    %223 = math.tanh %222 : vector<8x128xf32>
    %cst_58 = arith.constant 5.000000e-01 : f32
    %224 = vector.broadcast %cst_58 : f32 to vector<8x128xf32>
    %225 = arith.mulf %224, %223 : vector<8x128xf32>
    %cst_59 = arith.constant 5.000000e-01 : f32
    %226 = vector.broadcast %cst_59 : f32 to vector<8x128xf32>
    %227 = arith.addf %225, %226 : vector<8x128xf32>
    %228 = math.tanh %220 : vector<8x128xf32>
    %229 = vector.extract_strided_slice %227 {offsets = [0, 0], sizes = [8, 32], strides = [1, 1]} : vector<8x128xf32> to vector<8x32xf32>
    %230 = vector.extract_strided_slice %227 {offsets = [0, 32], sizes = [8, 32], strides = [1, 1]} : vector<8x128xf32> to vector<8x32xf32>
    %231 = vector.extract_strided_slice %228 {offsets = [0, 64], sizes = [8, 32], strides = [1, 1]} : vector<8x128xf32> to vector<8x32xf32>
    %232 = vector.extract_strided_slice %227 {offsets = [0, 96], sizes = [8, 32], strides = [1, 1]} : vector<8x128xf32> to vector<8x32xf32>
    %233 = arith.mulf %230, %215 : vector<8x32xf32>
    %234 = arith.mulf %229, %231 : vector<8x32xf32>
    %235 = arith.addf %233, %234 : vector<8x32xf32>
    %236 = math.tanh %235 : vector<8x32xf32>
    %237 = arith.mulf %232, %236 : vector<8x32xf32>
    %238 = arith.truncf %237 : vector<8x32xf32> to vector<8x32xbf16>
    %cst_60 = arith.constant dense<0.000000e+00> : vector<8x128xf32>
    %239 = tpu.matmul %238, %4, %cst_60 {dimension_numbers = #tpu.dot_dimension_numbers<[1], [0], [0], [1], [0, 0, 1, 1], [], []>} : vector<8x32xbf16>, vector<32x128xbf16>, vector<8x128xf32> -> vector<8x128xf32>
    %240 = arith.addf %195, %239 : vector<8x128xf32>
    %cst_61 = arith.constant 5.000000e-01 : f32
    %241 = vector.broadcast %cst_61 : f32 to vector<8x128xf32>
    %242 = arith.mulf %241, %240 : vector<8x128xf32>
    %243 = math.tanh %242 : vector<8x128xf32>
    %cst_62 = arith.constant 5.000000e-01 : f32
    %244 = vector.broadcast %cst_62 : f32 to vector<8x128xf32>
    %245 = arith.mulf %244, %243 : vector<8x128xf32>
    %cst_63 = arith.constant 5.000000e-01 : f32
    %246 = vector.broadcast %cst_63 : f32 to vector<8x128xf32>
    %247 = arith.addf %245, %246 : vector<8x128xf32>
    %248 = math.tanh %240 : vector<8x128xf32>
    %249 = vector.extract_strided_slice %247 {offsets = [0, 0], sizes = [8, 32], strides = [1, 1]} : vector<8x128xf32> to vector<8x32xf32>
    %250 = vector.extract_strided_slice %247 {offsets = [0, 32], sizes = [8, 32], strides = [1, 1]} : vector<8x128xf32> to vector<8x32xf32>
    %251 = vector.extract_strided_slice %248 {offsets = [0, 64], sizes = [8, 32], strides = [1, 1]} : vector<8x128xf32> to vector<8x32xf32>
    %252 = vector.extract_strided_slice %247 {offsets = [0, 96], sizes = [8, 32], strides = [1, 1]} : vector<8x128xf32> to vector<8x32xf32>
    %253 = arith.mulf %250, %235 : vector<8x32xf32>
    %254 = arith.mulf %249, %251 : vector<8x32xf32>
    %255 = arith.addf %253, %254 : vector<8x32xf32>
    %256 = math.tanh %255 : vector<8x32xf32>
    %257 = arith.mulf %252, %256 : vector<8x32xf32>
    %258 = arith.truncf %257 : vector<8x32xf32> to vector<8x32xbf16>
    %cst_64 = arith.constant dense<0.000000e+00> : vector<8x128xf32>
    %259 = tpu.matmul %258, %4, %cst_64 {dimension_numbers = #tpu.dot_dimension_numbers<[1], [0], [0], [1], [0, 0, 1, 1], [], []>} : vector<8x32xbf16>, vector<32x128xbf16>, vector<8x128xf32> -> vector<8x128xf32>
    %260 = arith.addf %195, %259 : vector<8x128xf32>
    %cst_65 = arith.constant 5.000000e-01 : f32
    %261 = vector.broadcast %cst_65 : f32 to vector<8x128xf32>
    %262 = arith.mulf %261, %260 : vector<8x128xf32>
    %263 = math.tanh %262 : vector<8x128xf32>
    %cst_66 = arith.constant 5.000000e-01 : f32
    %264 = vector.broadcast %cst_66 : f32 to vector<8x128xf32>
    %265 = arith.mulf %264, %263 : vector<8x128xf32>
    %cst_67 = arith.constant 5.000000e-01 : f32
    %266 = vector.broadcast %cst_67 : f32 to vector<8x128xf32>
    %267 = arith.addf %265, %266 : vector<8x128xf32>
    %268 = math.tanh %260 : vector<8x128xf32>
    %269 = vector.extract_strided_slice %267 {offsets = [0, 0], sizes = [8, 32], strides = [1, 1]} : vector<8x128xf32> to vector<8x32xf32>
    %270 = vector.extract_strided_slice %267 {offsets = [0, 32], sizes = [8, 32], strides = [1, 1]} : vector<8x128xf32> to vector<8x32xf32>
    %271 = vector.extract_strided_slice %268 {offsets = [0, 64], sizes = [8, 32], strides = [1, 1]} : vector<8x128xf32> to vector<8x32xf32>
    %272 = vector.extract_strided_slice %267 {offsets = [0, 96], sizes = [8, 32], strides = [1, 1]} : vector<8x128xf32> to vector<8x32xf32>
    %273 = arith.mulf %270, %255 : vector<8x32xf32>
    %274 = arith.mulf %269, %271 : vector<8x32xf32>
    %275 = arith.addf %273, %274 : vector<8x32xf32>
    %276 = math.tanh %275 : vector<8x32xf32>
    %277 = arith.mulf %272, %276 : vector<8x32xf32>
    %278 = arith.truncf %277 : vector<8x32xf32> to vector<8x32xbf16>
    %cst_68 = arith.constant dense<0.000000e+00> : vector<8x128xf32>
    %279 = tpu.matmul %278, %4, %cst_68 {dimension_numbers = #tpu.dot_dimension_numbers<[1], [0], [0], [1], [0, 0, 1, 1], [], []>} : vector<8x32xbf16>, vector<32x128xbf16>, vector<8x128xf32> -> vector<8x128xf32>
    %280 = arith.addf %195, %279 : vector<8x128xf32>
    %cst_69 = arith.constant 5.000000e-01 : f32
    %281 = vector.broadcast %cst_69 : f32 to vector<8x128xf32>
    %282 = arith.mulf %281, %280 : vector<8x128xf32>
    %283 = math.tanh %282 : vector<8x128xf32>
    %cst_70 = arith.constant 5.000000e-01 : f32
    %284 = vector.broadcast %cst_70 : f32 to vector<8x128xf32>
    %285 = arith.mulf %284, %283 : vector<8x128xf32>
    %cst_71 = arith.constant 5.000000e-01 : f32
    %286 = vector.broadcast %cst_71 : f32 to vector<8x128xf32>
    %287 = arith.addf %285, %286 : vector<8x128xf32>
    %288 = math.tanh %280 : vector<8x128xf32>
    %289 = vector.extract_strided_slice %287 {offsets = [0, 0], sizes = [8, 32], strides = [1, 1]} : vector<8x128xf32> to vector<8x32xf32>
    %290 = vector.extract_strided_slice %287 {offsets = [0, 32], sizes = [8, 32], strides = [1, 1]} : vector<8x128xf32> to vector<8x32xf32>
    %291 = vector.extract_strided_slice %288 {offsets = [0, 64], sizes = [8, 32], strides = [1, 1]} : vector<8x128xf32> to vector<8x32xf32>
    %292 = vector.extract_strided_slice %287 {offsets = [0, 96], sizes = [8, 32], strides = [1, 1]} : vector<8x128xf32> to vector<8x32xf32>
    %293 = arith.mulf %290, %275 : vector<8x32xf32>
    %294 = arith.mulf %289, %291 : vector<8x32xf32>
    %295 = arith.addf %293, %294 : vector<8x32xf32>
    %296 = math.tanh %295 : vector<8x32xf32>
    %297 = arith.mulf %292, %296 : vector<8x32xf32>
    %298 = arith.truncf %297 : vector<8x32xf32> to vector<8x32xbf16>
    %cst_72 = arith.constant dense<0.000000e+00> : vector<8x128xf32>
    %299 = tpu.matmul %298, %4, %cst_72 {dimension_numbers = #tpu.dot_dimension_numbers<[1], [0], [0], [1], [0, 0, 1, 1], [], []>} : vector<8x32xbf16>, vector<32x128xbf16>, vector<8x128xf32> -> vector<8x128xf32>
    %300 = arith.addf %195, %299 : vector<8x128xf32>
    %cst_73 = arith.constant 5.000000e-01 : f32
    %301 = vector.broadcast %cst_73 : f32 to vector<8x128xf32>
    %302 = arith.mulf %301, %300 : vector<8x128xf32>
    %303 = math.tanh %302 : vector<8x128xf32>
    %cst_74 = arith.constant 5.000000e-01 : f32
    %304 = vector.broadcast %cst_74 : f32 to vector<8x128xf32>
    %305 = arith.mulf %304, %303 : vector<8x128xf32>
    %cst_75 = arith.constant 5.000000e-01 : f32
    %306 = vector.broadcast %cst_75 : f32 to vector<8x128xf32>
    %307 = arith.addf %305, %306 : vector<8x128xf32>
    %308 = math.tanh %300 : vector<8x128xf32>
    %309 = vector.extract_strided_slice %307 {offsets = [0, 0], sizes = [8, 32], strides = [1, 1]} : vector<8x128xf32> to vector<8x32xf32>
    %310 = vector.extract_strided_slice %307 {offsets = [0, 32], sizes = [8, 32], strides = [1, 1]} : vector<8x128xf32> to vector<8x32xf32>
    %311 = vector.extract_strided_slice %308 {offsets = [0, 64], sizes = [8, 32], strides = [1, 1]} : vector<8x128xf32> to vector<8x32xf32>
    %312 = vector.extract_strided_slice %307 {offsets = [0, 96], sizes = [8, 32], strides = [1, 1]} : vector<8x128xf32> to vector<8x32xf32>
    %313 = arith.mulf %310, %295 : vector<8x32xf32>
    %314 = arith.mulf %309, %311 : vector<8x32xf32>
    %315 = arith.addf %313, %314 : vector<8x32xf32>
    %316 = math.tanh %315 : vector<8x32xf32>
    %317 = arith.mulf %312, %316 : vector<8x32xf32>
    %318 = arith.truncf %317 : vector<8x32xf32> to vector<8x32xbf16>
    %cst_76 = arith.constant dense<0.000000e+00> : vector<8x128xf32>
    %319 = tpu.matmul %318, %4, %cst_76 {dimension_numbers = #tpu.dot_dimension_numbers<[1], [0], [0], [1], [0, 0, 1, 1], [], []>} : vector<8x32xbf16>, vector<32x128xbf16>, vector<8x128xf32> -> vector<8x128xf32>
    %320 = arith.addf %195, %319 : vector<8x128xf32>
    %cst_77 = arith.constant 5.000000e-01 : f32
    %321 = vector.broadcast %cst_77 : f32 to vector<8x128xf32>
    %322 = arith.mulf %321, %320 : vector<8x128xf32>
    %323 = math.tanh %322 : vector<8x128xf32>
    %cst_78 = arith.constant 5.000000e-01 : f32
    %324 = vector.broadcast %cst_78 : f32 to vector<8x128xf32>
    %325 = arith.mulf %324, %323 : vector<8x128xf32>
    %cst_79 = arith.constant 5.000000e-01 : f32
    %326 = vector.broadcast %cst_79 : f32 to vector<8x128xf32>
    %327 = arith.addf %325, %326 : vector<8x128xf32>
    %328 = math.tanh %320 : vector<8x128xf32>
    %329 = vector.extract_strided_slice %327 {offsets = [0, 0], sizes = [8, 32], strides = [1, 1]} : vector<8x128xf32> to vector<8x32xf32>
    %330 = vector.extract_strided_slice %327 {offsets = [0, 32], sizes = [8, 32], strides = [1, 1]} : vector<8x128xf32> to vector<8x32xf32>
    %331 = vector.extract_strided_slice %328 {offsets = [0, 64], sizes = [8, 32], strides = [1, 1]} : vector<8x128xf32> to vector<8x32xf32>
    %332 = vector.extract_strided_slice %327 {offsets = [0, 96], sizes = [8, 32], strides = [1, 1]} : vector<8x128xf32> to vector<8x32xf32>
    %333 = arith.mulf %330, %315 : vector<8x32xf32>
    %334 = arith.mulf %329, %331 : vector<8x32xf32>
    %335 = arith.addf %333, %334 : vector<8x32xf32>
    %336 = math.tanh %335 : vector<8x32xf32>
    %337 = arith.mulf %332, %336 : vector<8x32xf32>
    %338 = arith.truncf %337 : vector<8x32xf32> to vector<8x32xbf16>
    %cst_80 = arith.constant dense<0.000000e+00> : vector<8x128xf32>
    %339 = tpu.matmul %338, %4, %cst_80 {dimension_numbers = #tpu.dot_dimension_numbers<[1], [0], [0], [1], [0, 0, 1, 1], [], []>} : vector<8x32xbf16>, vector<32x128xbf16>, vector<8x128xf32> -> vector<8x128xf32>
    %340 = arith.addf %195, %339 : vector<8x128xf32>
    %cst_81 = arith.constant 5.000000e-01 : f32
    %341 = vector.broadcast %cst_81 : f32 to vector<8x128xf32>
    %342 = arith.mulf %341, %340 : vector<8x128xf32>
    %343 = math.tanh %342 : vector<8x128xf32>
    %cst_82 = arith.constant 5.000000e-01 : f32
    %344 = vector.broadcast %cst_82 : f32 to vector<8x128xf32>
    %345 = arith.mulf %344, %343 : vector<8x128xf32>
    %cst_83 = arith.constant 5.000000e-01 : f32
    %346 = vector.broadcast %cst_83 : f32 to vector<8x128xf32>
    %347 = arith.addf %345, %346 : vector<8x128xf32>
    %348 = math.tanh %340 : vector<8x128xf32>
    %349 = vector.extract_strided_slice %347 {offsets = [0, 0], sizes = [8, 32], strides = [1, 1]} : vector<8x128xf32> to vector<8x32xf32>
    %350 = vector.extract_strided_slice %347 {offsets = [0, 32], sizes = [8, 32], strides = [1, 1]} : vector<8x128xf32> to vector<8x32xf32>
    %351 = vector.extract_strided_slice %348 {offsets = [0, 64], sizes = [8, 32], strides = [1, 1]} : vector<8x128xf32> to vector<8x32xf32>
    %352 = vector.extract_strided_slice %347 {offsets = [0, 96], sizes = [8, 32], strides = [1, 1]} : vector<8x128xf32> to vector<8x32xf32>
    %353 = arith.mulf %350, %335 : vector<8x32xf32>
    %354 = arith.mulf %349, %351 : vector<8x32xf32>
    %355 = arith.addf %353, %354 : vector<8x32xf32>
    %356 = math.tanh %355 : vector<8x32xf32>
    %357 = arith.mulf %352, %356 : vector<8x32xf32>
    %358 = tpu.concatenate %217, %237, %257, %277, %297, %317, %337, %357 in 0 : vector<8x32xf32>, vector<8x32xf32>, vector<8x32xf32>, vector<8x32xf32>, vector<8x32xf32>, vector<8x32xf32>, vector<8x32xf32>, vector<8x32xf32> -> vector<64x32xf32>
    %359 = arith.truncf %358 : vector<64x32xf32> to vector<64x32xbf16>
    %cst_84 = arith.constant dense<0.000000e+00> : vector<64x128xf32>
    %360 = tpu.matmul %359, %5, %cst_84 {dimension_numbers = #tpu.dot_dimension_numbers<[1], [0], [0], [1], [0, 0, 1, 1], [], []>} : vector<64x32xbf16>, vector<32x128xbf16>, vector<64x128xf32> -> vector<64x128xf32>
    %361 = vector.broadcast %8 : vector<1x128xf32> to vector<64x128xf32>
    %362 = arith.addf %360, %361 : vector<64x128xf32>
    %363 = vector.extract_strided_slice %362 {offsets = [0, 0], sizes = [8, 128], strides = [1, 1]} : vector<64x128xf32> to vector<8x128xf32>
    %c0_85 = arith.constant 0 : index
    %c0_86 = arith.constant 0 : index
    %364 = vector.load %arg3[%c0_85, %c0_86] : memref<8x1024xf32, #tpu.memory_space<vmem>>, vector<8x128xf32>
    tpu.vector_store %arg3[%c0_85, %c0_86], %363 {strides = array<i32>} : memref<8x1024xf32, #tpu.memory_space<vmem>>, vector<8x128xf32>,
    %365 = vector.extract_strided_slice %362 {offsets = [8, 0], sizes = [8, 128], strides = [1, 1]} : vector<64x128xf32> to vector<8x128xf32>
    %c0_87 = arith.constant 0 : index
    %c128_88 = arith.constant 128 : index
    %366 = vector.load %arg3[%c0_87, %c128_88] : memref<8x1024xf32, #tpu.memory_space<vmem>>, vector<8x128xf32>
    tpu.vector_store %arg3[%c0_87, %c128_88], %365 {strides = array<i32>} : memref<8x1024xf32, #tpu.memory_space<vmem>>, vector<8x128xf32>,
    %367 = vector.extract_strided_slice %362 {offsets = [16, 0], sizes = [8, 128], strides = [1, 1]} : vector<64x128xf32> to vector<8x128xf32>
    %c0_89 = arith.constant 0 : index
    %c256 = arith.constant 256 : index
    %368 = vector.load %arg3[%c0_89, %c256] : memref<8x1024xf32, #tpu.memory_space<vmem>>, vector<8x128xf32>
    tpu.vector_store %arg3[%c0_89, %c256], %367 {strides = array<i32>} : memref<8x1024xf32, #tpu.memory_space<vmem>>, vector<8x128xf32>,
    %369 = vector.extract_strided_slice %362 {offsets = [24, 0], sizes = [8, 128], strides = [1, 1]} : vector<64x128xf32> to vector<8x128xf32>
    %c0_90 = arith.constant 0 : index
    %c384 = arith.constant 384 : index
    %370 = vector.load %arg3[%c0_90, %c384] : memref<8x1024xf32, #tpu.memory_space<vmem>>, vector<8x128xf32>
    tpu.vector_store %arg3[%c0_90, %c384], %369 {strides = array<i32>} : memref<8x1024xf32, #tpu.memory_space<vmem>>, vector<8x128xf32>,
    %371 = vector.extract_strided_slice %362 {offsets = [32, 0], sizes = [8, 128], strides = [1, 1]} : vector<64x128xf32> to vector<8x128xf32>
    %c0_91 = arith.constant 0 : index
    %c512 = arith.constant 512 : index
    %372 = vector.load %arg3[%c0_91, %c512] : memref<8x1024xf32, #tpu.memory_space<vmem>>, vector<8x128xf32>
    tpu.vector_store %arg3[%c0_91, %c512], %371 {strides = array<i32>} : memref<8x1024xf32, #tpu.memory_space<vmem>>, vector<8x128xf32>,
    %373 = vector.extract_strided_slice %362 {offsets = [40, 0], sizes = [8, 128], strides = [1, 1]} : vector<64x128xf32> to vector<8x128xf32>
    %c0_92 = arith.constant 0 : index
    %c640 = arith.constant 640 : index
    %374 = vector.load %arg3[%c0_92, %c640] : memref<8x1024xf32, #tpu.memory_space<vmem>>, vector<8x128xf32>
    tpu.vector_store %arg3[%c0_92, %c640], %373 {strides = array<i32>} : memref<8x1024xf32, #tpu.memory_space<vmem>>, vector<8x128xf32>,
    %375 = vector.extract_strided_slice %362 {offsets = [48, 0], sizes = [8, 128], strides = [1, 1]} : vector<64x128xf32> to vector<8x128xf32>
    %c0_93 = arith.constant 0 : index
    %c768 = arith.constant 768 : index
    %376 = vector.load %arg3[%c0_93, %c768] : memref<8x1024xf32, #tpu.memory_space<vmem>>, vector<8x128xf32>
    tpu.vector_store %arg3[%c0_93, %c768], %375 {strides = array<i32>} : memref<8x1024xf32, #tpu.memory_space<vmem>>, vector<8x128xf32>,
    %377 = vector.extract_strided_slice %362 {offsets = [56, 0], sizes = [8, 128], strides = [1, 1]} : vector<64x128xf32> to vector<8x128xf32>
    %c0_94 = arith.constant 0 : index
    %c896 = arith.constant 896 : index
    %378 = vector.load %arg3[%c0_94, %c896] : memref<8x1024xf32, #tpu.memory_space<vmem>>, vector<8x128xf32>
    tpu.vector_store %arg3[%c0_94, %c896], %377 {strides = array<i32>} : memref<8x1024xf32, #tpu.memory_space<vmem>>, vector<8x128xf32>,
    return
  }
}

</mosaic_0001>

<bundles_post_ra>
// kernel: tpu_custom_call.1
= control target key start
LH: loop header
LB: loop body
LE: loop exit
PB: predicated region body
PF: predicated region fallthrough
CT: control target
= control target key end

     0   :  { %8 = vsyncpa [#allocation3], 0  ;;  %s2456_s0 = inlined_call_operand.vmem [shape: s32[64,1], index: 0, kind: input, shape index: {}]   ;;  %s2457_s1 = inlined_call_operand.hbm [shape: bf16[224,128], index: 1, kind: input, shape index: {}]   ;;  %s2458_s2 = inlined_call_operand.vmem [shape: f32[8,128], index: 2, kind: input, shape index: {}]   ;;  %s2459_s3 = inlined_call_operand.hbm [shape: f32[8,1024], index: 3, kind: output, shape index: {}]  }
   0x1   :  { %9 = vsyncpa [#allocation4], 0  ;;  %s2102_s12 = smov [#allocation2]   ;;  %s2054_s16 = scalar_lea.hbm %s2457_s1, 1792 }
   0x2   :  { %s17_s13 = sshll.u32 %s2102_s12, 4  ;;  %p2055_p0 = scmp.ne.s32.totalorder %s2457_s1, %s2054_s16  ;;  %s18_s13 = int_to_ptr.vmem [resolvable:$true] %s17_s13 }
   0x3   :  { %p2058_p1 = scmp.lt.u32.totalorder %s2054_s16, %s2457_s1 }
   0x5   :  { %p2060_p2 = pnand %p2058_p1, %p2055_p0 }
   0x7   :  { %2063 = shalt.err (!%p2060_p2)
}
   0x8   :  { %s2064_s21 = scalar_lea.vmem %s18_s13, 1792  ;;  %p2069_p4 = scmp.lt.s32.totalorder %s18_s13, %s18_s13 }
   0x9   :  { %p2065_p3 = scmp.ne.s32.totalorder %s18_s13, %s2064_s21  ;;  %p2070_p5 = scmp.lt.s32.totalorder %s2064_s21, %s2064_s21 }
   0xb   :  { %p2071_p6 = por %p2070_p5, %p2069_p4 }
   0xd   :  { %p2072_p7 = pnand %p2071_p6, %p2065_p3 }
   0xf   :  { %2075 = shalt.err (!%p2072_p7)
}
  0x10   :  { %s2103_s22 = smov 64   ;;  %s2104_s23 = smov 4  }
  0x11   :  { %23 = dma.hbm_to_vmem [thread:$0]  %s2457_s1, 1792, %s18_s13, [#allocation3], %s2103_s22, %s2103_s22, %s2104_s23  }
  0x12   :  { %2098 = dma.done.wait [#allocation3], 1792  }
  0x13   :  { %2099 = vsyncadd [#allocation3], 4294965504  ;;  %v2105_v0 = vmov 0   ;;  %v63_v1 = vld [vmem:[%s2456_s0 + $0x10] sm:$0xff]  ;;  %v61_v2 = vld [vmem:[%s2456_s0] sm:$0xff]  ;;  %v2106_v14 = vmov 0.0   ;;  %v69_v15 = vlaneseq }
  0x14   :  { %1943 = vset.pattern.permute.xlu1 %v2105_v0  ;;  %1942 = vset.pattern.permute.xlu0 %v2105_v0  ;;  %v64_v3 = vld [vmem:[%s2456_s0 + $0x18] sm:$0xff]  ;;  %v62_v4 = vld [vmem:[%s2456_s0 + $0x8] sm:$0xff]  ;;  %v1945_v6 = vld [vmem:[#allocation2 + $0x8] sm:$0xff]   ;;  %vm139_vm4 = vcmask 523264   ;;  %vm2107_vm9 = vmmov 0   ;;  %vm237_vm10 = vcmask 261120  }
  0x15   :  { %78 = vperm.xlu1 %1943, %v63_v1   ;;  %72 = vperm.xlu0 %1942, %v61_v2   ;;  %v1944_v5 = vld [vmem:[#allocation2] sm:$0xff]   ;;  %v65_v8 = vld [vmem:[%s2456_s0 + $0x20] sm:$0xff]  ;;  %v68_v9 = vld [vmem:[%s2456_s0 + $0x38] sm:$0xff]  ;;  %v70_v16 = vand.u32 127, %v69_v15  ;;  %s2108_s15 = smov 32   ;;  %s2109_s20 = smov [#allocation5]  }
  0x16   :  { %v66_v7 = vld [vmem:[%s2456_s0 + $0x28] sm:$0xff]  ;;  %1758 = vmatprep.subr.bf16.mxu0 %v1944_v5  ;;  %v67_v10 = vld [vmem:[%s2456_s0 + $0x30] sm:$0xff]  ;;  %v1946_v11 = vld [vmem:[#allocation2 + $0x10] sm:$0xff]   ;;  %s1634_s21 = sshll.u32 %s2109_s20, 4  ;;  %s1635_s21 = int_to_ptr.vmem [resolvable:$true] %s1634_s21 }
  0x17   :  { %1759 = vmatpush3.bf16.msra.mxu0 %v1944_v5  ;;  %v1947_v12 = vld [vmem:[#allocation2 + $0x18] sm:$0xff]   ;;  %v1948_v13 = vld [vmem:[#allocation2 + $0x20] sm:$0xff]   ;;  %v1949_v37 = vld [vmem:[#allocation2 + $0x28] sm:$0xff]   ;;  %p2081_p9 = scmp.lt.s32.totalorder %s1635_s21, %s1635_s21 }
  0x18   :  { %1760 = vmatprep.subr.bf16.mxu0 %v1945_v6  ;;  %1774 = vmatprep.subr.bf16.mxu1 %v1948_v13  ;;  %v2184_v38 = vld [vmem:[#allocation2 + $0x30] sm:$0xff]   ;;  %v2188_v39 = vld [vmem:[#allocation2 + $0x38] sm:$0xff]  }
  0x19   :  { %81 = vperm.xlu1 %1943, %v64_v3   ;;  %75 = vperm.xlu0 %1942, %v62_v4   ;;  %v1651_v52 = vld [vmem:[%s2458_s2] ss:$0 sm:$0xff] }
  0x1a   :  { %1775 = vmatpush3.bf16.msra.mxu1 %v1948_v13 }
  0x1b   :  { %1761 = vmatpush3.bf16.msra.mxu0 %v1945_v6  ;;  %1776 = vmatprep.subr.bf16.mxu1 %v1949_v37 }
  0x1c   :  { %1762 = vmatprep.subr.bf16.mxu0 %v1946_v11 }
  0x1d   :  { %87 = vperm.xlu1 %1943, %v66_v7   ;;  %84 = vperm.xlu0 %1942, %v65_v8  }
  0x1e   :  { %1777 = vmatpush3.bf16.msra.mxu1 %v1949_v37 }
  0x1f   :  { %1763 = vmatpush3.bf16.msra.mxu0 %v1946_v11  ;;  %1786 = vmatprep.subr.bf16.mxu1 %v2106_v14 }
  0x20   :  { %1764 = vmatprep.subr.bf16.mxu0 %v1947_v12 }
  0x21   :  { %93 = vperm.xlu1 %1943, %v68_v9   ;;  %90 = vperm.xlu0 %1942, %v67_v10  }
  0x23   :  { %1765 = vmatpush3.bf16.msra.mxu0 %v1947_v12 }
  0x24   :  { %1810 = vmatprep.subr.bf16.mxu0 %v2106_v14 }
  0x94   :  { %v79_v17 = vpop.permute.xlu1 %78  ;;  %v73_v18 = vpop.permute.xlu0 %72 }
  0x95   :  { %vm97_vm0 = vcmp.eq.s32.totalorder %v70_v16, %v79_v17  ;;  %vm95_vm1 = vcmp.eq.s32.totalorder %v70_v16, %v73_v18 }
  0x96   :  { %v105_v21 = vsel %vm97_vm0, 1.0, %v2106_v14  ;;  %v103_v22 = vsel %vm95_vm1, 1.0, %v2106_v14 }
  0x98   :  { %v82_v19 = vpop.permute.xlu1 %81  ;;  %v76_v20 = vpop.permute.xlu0 %75 }
  0x99   :  { %vm98_vm2 = vcmp.eq.s32.totalorder %v70_v16, %v82_v19  ;;  %vm96_vm3 = vcmp.eq.s32.totalorder %v70_v16, %v76_v20 }
  0x9a   :  { %v106_v23 = vsel %vm98_vm2, 1.0, %v2106_v14  ;;  %v104_v24 = vsel %vm96_vm3, 1.0, %v2106_v14 }
  0x9b   :  { %v112_v25 = vpack.c.bf16 %v106_v23, %v105_v21  ;;  %v111_v26 = vpack.c.bf16 %v104_v24, %v103_v22 }
  0x9c   :  { %v88_v27 = vpop.permute.xlu1 %87  ;;  %v85_v28 = vpop.permute.xlu0 %84 }
  0x9d   :  { %vm100_vm5 = vcmp.eq.s32.totalorder %v70_v16, %v88_v27  ;;  %vm99_vm6 = vcmp.eq.s32.totalorder %v70_v16, %v85_v28  ;;  %1766 = vmatprep.mubr.msk.bf16.mxu0 %vm139_vm4, %v111_v26 }
  0x9e   :  { %v108_v29 = vsel %vm100_vm5, 1.0, %v2106_v14  ;;  %v107_v30 = vsel %vm99_vm6, 1.0, %v2106_v14  ;;  %1767 = vmatmul.mubr.msk.bf16.vlgmr.msra.gmra.mrb[0].mxu0 %vm139_vm4, %v112_v25 }
  0x9f   :  { %v113_v31 = vpack.c.bf16 %v108_v29, %v107_v30  ;;  %1811 = vmatpush3.bf16.msra.mxu0 %v2184_v38 }
  0xa0   :  { %v94_v32 = vpop.permute.xlu1 %93  ;;  %v91_v33 = vpop.permute.xlu0 %90  ;;  %1812 = vmatprep.subr.bf16.mxu0 %v2106_v14 }
  0xa1   :  { %vm102_vm7 = vcmp.eq.s32.totalorder %v70_v16, %v94_v32  ;;  %vm101_vm8 = vcmp.eq.s32.totalorder %v70_v16, %v91_v33  ;;  %1770 = vmatprep.mubr.msk.bf16.mxu0 %vm139_vm4, %v113_v31 }
  0xa2   :  { %v110_v34 = vsel %vm102_vm7, 1.0, %v2106_v14  ;;  %v109_v35 = vsel %vm101_vm8, 1.0, %v2106_v14 }
  0xa3   :  { %v114_v36 = vpack.c.bf16 %v110_v34, %v109_v35  ;;  %1813 = vmatpush3.bf16.msra.mxu0 %v2188_v39 }
  0xa4   :  { %1826 = vmatprep.subr.bf16.mxu0 %v2106_v14 }
  0xa6   :  { %1771 = vmatmul.mubr.msk.bf16.gmra.mrb[4].mxu0 %vm139_vm4, %v114_v36 }
  0xa7   :  { %1814 = vmatprep.mubr.msk.bf16.mxu0 %vm2107_vm9, %v2106_v14 }
 0x171   :  { %v1768_v40 = vpop.f32.mrb[0].mxu0 }
 0x172   :  { %v186_v41 = vpop.f32.mrb[1].mxu0 }
 0x173   :  { %v1769_v42 = vpop.f32.mrb[2].mxu0 }
 0x174   :  { %v218_v43 = vpack.c.bf16 %v1769_v42, %v1768_v40  ;;  %v189_v44 = vpop.f32.mrb[3].mxu0 }
 0x175   :  { %v217_v45 = vpack.c.bf16 %v189_v44, %v186_v41 }
 0x177   :  { %1778 = vmatprep.mubr.msk.bf16.mxu1 %vm237_vm10, %v217_v45 }
 0x178   :  { %1779 = vmatmul.mubr.msk.bf16.vlgmr.msra.gmra.mrb[0].mxu1 %vm237_vm10, %v218_v43 }
 0x179   :  { %1787 = vmatpush3.bf16.msra.mxu1 %v2184_v38  ;;  %v1772_v46 = vpop.f32.mrb[4].mxu0 }
 0x17a   :  { %v202_v47 = vpop.f32.mrb[5].mxu0  ;;  %1788 = vmatprep.subr.bf16.mxu1 %v2106_v14 }
 0x17b   :  { %v1773_v48 = vpop.f32.mrb[6].mxu0 }
 0x17c   :  { %v220_v49 = vpack.c.bf16 %v1773_v48, %v1772_v46  ;;  %v205_v50 = vpop.f32.mrb[7].mxu0 }
 0x17d   :  { %v219_v51 = vpack.c.bf16 %v205_v50, %v202_v47  ;;  %1789 = vmatpush3.bf16.msra.mxu1 %v2188_v39 }
 0x17e   :  { %1794 = vmatprep.subr.bf16.mxu1 %v2106_v14 }
 0x17f   :  { %1782 = vmatprep.mubr.msk.bf16.mxu1 %vm237_vm10, %v219_v51 }
 0x180   :  { %1783 = vmatmul.mubr.msk.bf16.gmra.mrb[4].mxu1 %vm237_vm10, %v220_v49 }
 0x181   :  { %1790 = vmatprep.mubr.msk.bf16.mxu1 %vm2107_vm9, %v2106_v14 }
 0x188   :  { %1791 = vmatmul.mubr.bf16.vlgmr.msra.gmra.mrb[8].mxu1 %v2105_v0 }
 0x189   :  { %1795 = vmatpush3.bf16.msra.mxu1 %v2184_v38  ;;  %1798 = vmatprep.mubr.msk.bf16.mxu1 %vm2107_vm9, %v2106_v14 }
 0x18a   :  { %1796 = vmatprep.subr.bf16.mxu1 %v2106_v14 }
 0x18d   :  { %1797 = vmatpush3.bf16.msra.mxu1 %v2188_v39 }
 0x18e   :  { %1802 = vmatprep.subr.bf16.mxu1 %v2106_v14 }
 0x24b   :  { %v1780_v53 = vpop.f32.mrb[0].mxu1 }
 0x24c   :  { %v2214_v54 = vadd.f32 %v1780_v53, %v1651_v52  ;;  %v284_v55 = vpop.f32.mrb[1].mxu1 }
 0x24d   :  { %v1781_v56 = vpop.f32.mrb[2].mxu1  ;;  %v285_v5 = vadd.f32 %v1651_v52, %v284_v55 }
 0x24e   :  { %v2216_v57 = vadd.f32 %v1781_v56, %v1651_v52  ;;  %v287_v58 = vpop.f32.mrb[3].mxu1 }
 0x24f   :  { %v288_v59 = vadd.f32 %v1651_v52, %v287_v58 }
 0x253   :  { %v1784_v60 = vpop.f32.mrb[4].mxu1 }
 0x254   :  { %v2218_v61 = vadd.f32 %v1784_v60, %v1651_v52  ;;  %v300_v62 = vpop.f32.mrb[5].mxu1 }
 0x255   :  { %v2220_v63 = vadd.f32 %v1651_v52, %v300_v62  ;;  %v1785_v1 = vpop.f32.mrb[6].mxu1 }
 0x256   :  { %v2222_v2 = vadd.f32 %v1785_v1, %v1651_v52  ;;  %v303_v3 = vpop.f32.mrb[7].mxu1 }
 0x257   :  { %v2224_v4 = vadd.f32 %v1651_v52, %v303_v3 }
 0x25b   :  { %v364_v6 = vpop.f32.mrb[8].mxu1 }
 0x25c   :  { %v370_v7 = vadd.f32 %v364_v6, %v285_v5  ;;  %v1792_v8 = vpop.f32.mrb[9].mxu1 }
 0x25d   :  { %v367_v9 = vpop.f32.mrb[10].mxu1 }
 0x25e   :  { %1958 = vtanh.f32 %v370_v7  ;;  %v1793_v10 = vpop.f32.mrb[11].mxu1  ;;  %v371_v12 = vmul.f32 0.5, %v370_v7 }
 0x260   :  { %1960 = vtanh.f32 %v371_v12 }
 0x268   :  { %v1959_v11 = vpop.eup %1958 }
 0x269   :  { %378 = vrot.lane.b32.xlu0 %v1959_v11, %s2103_s22 }
 0x26a   :  { %v1961_v13 = vpop.eup %1960 }
 0x26b   :  { %v373_v15 = vmul.f32 0.5, %v1961_v13 }
 0x26d   :  { %v374_v16 = vadd.f32 0.5, %v373_v15 }
 0x26f   :  { %v376_v19 = vmul.f32 0.0, %v374_v16 }
 0x2db   :  { %v379_v17 = vpop.permute.xlu0 %378 }
 0x2dc   :  { %v381_v18 = vmul.f32 %v379_v17, %v374_v16 }
 0x2de   :  { %383 = vrot.lane.b32.xlu1 %v381_v18, %s2108_s15 }
 0x350   :  { %v384_v20 = vpop.permute.xlu1 %383 }
 0x351   :  { %v386_v21 = vadd.f32 %v384_v20, %v376_v19 }
 0x353   :  { %1962 = vtanh.f32 %v386_v21 }
 0x35d   :  { %v1963_v22 = vpop.eup %1962 }
 0x35e   :  { %389 = vrot.lane.b32.xlu0 %v1963_v22, %s2103_s22 }
 0x3d0   :  { %v390_v23 = vpop.permute.xlu0 %389 }
 0x3d1   :  { %v392_v24 = vmul.f32 %v390_v23, %v374_v16 }
 0x3d3   :  { %v393_v25 = vpack.c.bf16 %v392_v24, %v392_v24 }
 0x3d5   :  { %395 = vrot.lane.b32.xlu1 %v393_v25, %s2108_s15 }
 0x447   :  { %v396_v26 = vpop.permute.xlu1 %395 }
 0x448   :  { %1799 = vmatmul.mubr.msk.bf16.vlgmr.msra.gmra.mrb[12].mxu1 %vm237_vm10, %v396_v26 }
 0x449   :  { %1803 = vmatpush3.bf16.msra.mxu1 %v2184_v38  ;;  %1806 = vmatprep.mubr.msk.bf16.mxu1 %vm2107_vm9, %v2106_v14 }
 0x44a   :  { %1804 = vmatprep.subr.bf16.mxu1 %v2106_v14 }
 0x44d   :  { %1805 = vmatpush3.bf16.msra.mxu1 %v2188_v39 }
 0x44e   :  { %1818 = vmatprep.subr.bf16.mxu1 %v2106_v14 }
 0x51b   :  { %v434_v27 = vpop.f32.mrb[12].mxu1 }
 0x51c   :  { %v440_v28 = vadd.f32 %v434_v27, %v288_v59  ;;  %v1800_v29 = vpop.f32.mrb[13].mxu1 }
 0x51d   :  { %v437_v30 = vpop.f32.mrb[14].mxu1 }
 0x51e   :  { %1964 = vtanh.f32 %v440_v28  ;;  %v1801_v31 = vpop.f32.mrb[15].mxu1  ;;  %v441_v33 = vmul.f32 0.5, %v440_v28 }
 0x520   :  { %1966 = vtanh.f32 %v441_v33 }
 0x528   :  { %v1965_v32 = vpop.eup %1964 }
 0x529   :  { %448 = vrot.lane.b32.xlu0 %v1965_v32, %s2103_s22 }
 0x52a   :  { %v1967_v34 = vpop.eup %1966 }
 0x52b   :  { %v443_v35 = vmul.f32 0.5, %v1967_v34 }
 0x52d   :  { %v444_v36 = vadd.f32 0.5, %v443_v35 }
 0x52f   :  { %v446_v41 = vmul.f32 %v444_v36, %v386_v21 }
 0x59b   :  { %v449_v37 = vpop.permute.xlu0 %448 }
 0x59c   :  { %v451_v40 = vmul.f32 %v449_v37, %v444_v36 }
 0x59e   :  { %453 = vrot.lane.b32.xlu1 %v451_v40, %s2108_s15 }
 0x610   :  { %v454_v42 = vpop.permute.xlu1 %453 }
 0x611   :  { %v456_v43 = vadd.f32 %v454_v42, %v446_v41 }
 0x613   :  { %1968 = vtanh.f32 %v456_v43 }
 0x61d   :  { %v1969_v44 = vpop.eup %1968 }
 0x61e   :  { %459 = vrot.lane.b32.xlu0 %v1969_v44, %s2103_s22 }
 0x690   :  { %v460_v45 = vpop.permute.xlu0 %459 }
 0x691   :  { %v462_v46 = vmul.f32 %v460_v45, %v444_v36 }
 0x693   :  { %v463_v47 = vpack.c.bf16 %v462_v46, %v462_v46 }
 0x695   :  { %465 = vrot.lane.b32.xlu1 %v463_v47, %s2108_s15 }
 0x707   :  { %v466_v48 = vpop.permute.xlu1 %465 }
 0x708   :  { %1807 = vmatmul.mubr.msk.bf16.vlgmr.msra.gmra.mrb[16].mxu1 %vm237_vm10, %v466_v48 }
 0x709   :  { %1819 = vmatpush3.bf16.msra.mxu1 %v2184_v38  ;;  %1822 = vmatprep.mubr.msk.bf16.mxu1 %vm2107_vm9, %v2106_v14 }
 0x70a   :  { %1820 = vmatprep.subr.bf16.mxu1 %v2106_v14 }
 0x70d   :  { %1821 = vmatpush3.bf16.msra.mxu1 %v2188_v39 }
 0x70e   :  { %1834 = vmatprep.subr.bf16.mxu1 %v2106_v14 }
 0x7db   :  { %v504_v49 = vpop.f32.mrb[16].mxu1 }
 0x7dc   :  { %v510_v50 = vadd.f32 %v504_v49, %v2214_v54  ;;  %v1808_v51 = vpop.f32.mrb[17].mxu1 }
 0x7dd   :  { %v507_v52 = vpop.f32.mrb[18].mxu1 }
 0x7de   :  { %1970 = vtanh.f32 %v510_v50  ;;  %v1809_v53 = vpop.f32.mrb[19].mxu1  ;;  %v511_v56 = vmul.f32 0.5, %v510_v50 }
 0x7e0   :  { %1972 = vtanh.f32 %v511_v56 }
 0x7e8   :  { %v1971_v55 = vpop.eup %1970 }
 0x7e9   :  { %518 = vrot.lane.b32.xlu0 %v1971_v55, %s2103_s22 }
 0x7ea   :  { %v1973_v58 = vpop.eup %1972 }
 0x7eb   :  { %v513_v59 = vmul.f32 0.5, %v1973_v58 }
 0x7ed   :  { %v514_v60 = vadd.f32 0.5, %v513_v59 }
 0x7ef   :  { %v516_v3 = vmul.f32 %v514_v60, %v456_v43 }
 0x85b   :  { %v519_v62 = vpop.permute.xlu0 %518 }
 0x85c   :  { %v521_v1 = vmul.f32 %v519_v62, %v514_v60 }
 0x85e   :  { %523 = vrot.lane.b32.xlu1 %v521_v1, %s2108_s15 }
 0x8d0   :  { %v524_v5 = vpop.permute.xlu1 %523 }
 0x8d1   :  { %v526_v6 = vadd.f32 %v524_v5, %v516_v3 }
 0x8d3   :  { %1974 = vtanh.f32 %v526_v6 }
 0x8dd   :  { %v1975_v54 = vpop.eup %1974 }
 0x8de   :  { %529 = vrot.lane.b32.xlu0 %v1975_v54, %s2103_s22 }
 0x950   :  { %v530_v7 = vpop.permute.xlu0 %529 }
 0x951   :  { %v532_v8 = vmul.f32 %v530_v7, %v514_v60 }
 0x953   :  { %v533_v9 = vpack.c.bf16 %v532_v8, %v532_v8 }
 0x955   :  { %535 = vrot.lane.b32.xlu1 %v533_v9, %s2108_s15 }
 0x9c7   :  { %v536_v10 = vpop.permute.xlu1 %535 }
 0x9c8   :  { %1815 = vmatmul.mubr.msk.bf16.vlgmr.msra.gmra.mrb[8].mxu0 %vm237_vm10, %v536_v10 }
 0x9c9   :  { %1827 = vmatpush3.bf16.msra.mxu0 %v2184_v38  ;;  %1830 = vmatprep.mubr.msk.bf16.mxu0 %vm2107_vm9, %v2106_v14 }
 0x9ca   :  { %1828 = vmatprep.subr.bf16.mxu0 %v2106_v14 }
 0x9cd   :  { %1829 = vmatpush3.bf16.msra.mxu0 %v2188_v39 }
 0x9ce   :  { %1842 = vmatprep.subr.bf16.mxu0 %v2106_v14 }
 0xa9b   :  { %v574_v11 = vpop.f32.mrb[8].mxu0 }
 0xa9c   :  { %v580_v12 = vadd.f32 %v574_v11, %v2216_v57  ;;  %v1816_v13 = vpop.f32.mrb[9].mxu0 }
 0xa9d   :  { %v577_v15 = vpop.f32.mrb[10].mxu0 }
 0xa9e   :  { %1976 = vtanh.f32 %v580_v12  ;;  %v1817_v16 = vpop.f32.mrb[11].mxu0  ;;  %v581_v18 = vmul.f32 0.5, %v580_v12 }
 0xaa0   :  { %1978 = vtanh.f32 %v581_v18 }
 0xaa8   :  { %v1977_v17 = vpop.eup %1976 }
 0xaa9   :  { %588 = vrot.lane.b32.xlu0 %v1977_v17, %s2103_s22 }
 0xaaa   :  { %v1979_v19 = vpop.eup %1978 }
 0xaab   :  { %v583_v20 = vmul.f32 0.5, %v1979_v19 }
 0xaad   :  { %v584_v21 = vadd.f32 0.5, %v583_v20 }
 0xaaf   :  { %v586_v24 = vmul.f32 %v584_v21, %v526_v6 }
 0xb1b   :  { %v589_v22 = vpop.permute.xlu0 %588 }
 0xb1c   :  { %v591_v23 = vmul.f32 %v589_v22, %v584_v21 }
 0xb1e   :  { %593 = vrot.lane.b32.xlu1 %v591_v23, %s2108_s15 }
 0xb90   :  { %v594_v25 = vpop.permute.xlu1 %593 }
 0xb91   :  { %v596_v26 = vadd.f32 %v594_v25, %v586_v24 }
 0xb93   :  { %1980 = vtanh.f32 %v596_v26 }
 0xb9d   :  { %v1981_v57 = vpop.eup %1980 }
 0xb9e   :  { %599 = vrot.lane.b32.xlu0 %v1981_v57, %s2103_s22 }
 0xc10   :  { %v600_v27 = vpop.permute.xlu0 %599 }
 0xc11   :  { %v602_v28 = vmul.f32 %v600_v27, %v584_v21 }
 0xc13   :  { %v603_v29 = vpack.c.bf16 %v602_v28, %v602_v28 }
 0xc15   :  { %605 = vrot.lane.b32.xlu1 %v603_v29, %s2108_s15 }
 0xc87   :  { %v606_v30 = vpop.permute.xlu1 %605 }
 0xc88   :  { %1823 = vmatmul.mubr.msk.bf16.vlgmr.msra.gmra.mrb[20].mxu1 %vm237_vm10, %v606_v30 }
 0xc89   :  { %1835 = vmatpush3.bf16.msra.mxu1 %v2184_v38  ;;  %1838 = vmatprep.mubr.msk.bf16.mxu1 %vm2107_vm9, %v2106_v14 }
 0xc8a   :  { %1836 = vmatprep.subr.bf16.mxu1 %v2106_v14 }
 0xc8d   :  { %1837 = vmatpush3.bf16.msra.mxu1 %v2188_v39 }
 0xc8e   :  { %1850 = vmatprep.subr.bf16.mxu1 %v2106_v14 }
 0xd5b   :  { %v644_v31 = vpop.f32.mrb[20].mxu1 }
 0xd5c   :  { %v650_v32 = vadd.f32 %v644_v31, %v2220_v63  ;;  %v1824_v33 = vpop.f32.mrb[21].mxu1 }
 0xd5d   :  { %v647_v34 = vpop.f32.mrb[22].mxu1 }
 0xd5e   :  { %1982 = vtanh.f32 %v650_v32  ;;  %v1825_v35 = vpop.f32.mrb[23].mxu1  ;;  %v651_v37 = vmul.f32 0.5, %v650_v32 }
 0xd60   :  { %1984 = vtanh.f32 %v651_v37 }
 0xd68   :  { %v1983_v36 = vpop.eup %1982 }
 0xd69   :  { %658 = vrot.lane.b32.xlu0 %v1983_v36, %s2103_s22 }
 0xd6a   :  { %v1985_v40 = vpop.eup %1984 }
 0xd6b   :  { %v653_v41 = vmul.f32 0.5, %v1985_v40 }
 0xd6d   :  { %v654_v42 = vadd.f32 0.5, %v653_v41 }
 0xd6f   :  { %v656_v45 = vmul.f32 %v654_v42, %v596_v26 }
 0xddb   :  { %v659_v43 = vpop.permute.xlu0 %658 }
 0xddc   :  { %v661_v44 = vmul.f32 %v659_v43, %v654_v42 }
 0xdde   :  { %663 = vrot.lane.b32.xlu1 %v661_v44, %s2108_s15 }
 0xe50   :  { %v664_v46 = vpop.permute.xlu1 %663 }
 0xe51   :  { %v666_v47 = vadd.f32 %v664_v46, %v656_v45 }
 0xe53   :  { %1986 = vtanh.f32 %v666_v47 }
 0xe5d   :  { %v1987_v63 = vpop.eup %1986 }
 0xe5e   :  { %669 = vrot.lane.b32.xlu0 %v1987_v63, %s2103_s22  ;;  %v1954_v63 = vld [vmem:[#allocation2 + $0x48] sm:$0xff]  }
 0xed0   :  { %v670_v48 = vpop.permute.xlu0 %669 }
 0xed1   :  { %v672_v49 = vmul.f32 %v670_v48, %v654_v42  ;;  %v2306_v48 = vld [vmem:[#allocation2 + $0x58] sm:$0xff]  }
 0xed3   :  { %v673_v50 = vpack.c.bf16 %v672_v49, %v672_v49 }
 0xed5   :  { %675 = vrot.lane.b32.xlu1 %v673_v50, %s2108_s15 }
 0xf47   :  { %v676_v51 = vpop.permute.xlu1 %675 }
 0xf48   :  { %1831 = vmatmul.mubr.msk.bf16.vlgmr.msra.gmra.mrb[12].mxu0 %vm237_vm10, %v676_v51 }
 0xf49   :  { %1843 = vmatpush3.bf16.msra.mxu0 %v2184_v38  ;;  %1846 = vmatprep.mubr.msk.bf16.mxu0 %vm2107_vm9, %v2106_v14 }
 0xf4a   :  { %1844 = vmatprep.subr.bf16.mxu0 %v2106_v14 }
 0xf4d   :  { %1845 = vmatpush3.bf16.msra.mxu0 %v2188_v39 }
 0xf4e   :  { %1858 = vmatprep.subr.bf16.mxu0 %v2106_v14 }
0x101b   :  { %v714_v52 = vpop.f32.mrb[12].mxu0 }
0x101c   :  { %v720_v53 = vadd.f32 %v714_v52, %v2224_v4  ;;  %v1832_v55 = vpop.f32.mrb[13].mxu0 }
0x101d   :  { %v717_v56 = vpop.f32.mrb[14].mxu0 }
0x101e   :  { %1988 = vtanh.f32 %v720_v53  ;;  %v1833_v58 = vpop.f32.mrb[15].mxu0  ;;  %v721_v38 = vmul.f32 0.5, %v720_v53 }
0x1020   :  { %1990 = vtanh.f32 %v721_v38 }
0x1028   :  { %v1989_v59 = vpop.eup %1988 }
0x1029   :  { %728 = vrot.lane.b32.xlu0 %v1989_v59, %s2103_s22  ;;  %v1667_v59 = vld [vmem:[%s2458_s2 + $0x1] ss:$0 sm:$0xff] }
0x102a   :  { %v1991_v60 = vpop.eup %1990 }
0x102b   :  { %v723_v62 = vmul.f32 0.5, %v1991_v60 }
0x102d   :  { %v724_v1 = vadd.f32 0.5, %v723_v62 }
0x102f   :  { %v726_v39 = vmul.f32 %v724_v1, %v666_v47  ;;  %v2303_v47 = vld [vmem:[#allocation2 + $0x50] sm:$0xff]  }
0x109b   :  { %v729_v3 = vpop.permute.xlu0 %728 }
0x109c   :  { %v731_v5 = vmul.f32 %v729_v3, %v724_v1 }
0x109e   :  { %733 = vrot.lane.b32.xlu1 %v731_v5, %s2108_s15 }
0x1110   :  { %v734_v6 = vpop.permute.xlu1 %733 }
0x1111   :  { %v736_v54 = vadd.f32 %v734_v6, %v726_v39 }
0x1113   :  { %1992 = vtanh.f32 %v736_v54 }
0x111d   :  { %v1993_v4 = vpop.eup %1992 }
0x111e   :  { %739 = vrot.lane.b32.xlu0 %v1993_v4, %s2103_s22 }
0x1190   :  { %v740_v7 = vpop.permute.xlu0 %739 }
0x1191   :  { %v742_v8 = vmul.f32 %v740_v7, %v724_v1 }
0x1193   :  { %v743_v9 = vpack.c.bf16 %v742_v8, %v742_v8 }
0x1195   :  { %745 = vrot.lane.b32.xlu1 %v743_v9, %s2108_s15 }
0x1207   :  { %v746_v10 = vpop.permute.xlu1 %745 }
0x1208   :  { %1839 = vmatmul.mubr.msk.bf16.vlgmr.msra.gmra.mrb[24].mxu1 %vm237_vm10, %v746_v10 }
0x1209   :  { %1854 = vmatprep.mubr.msk.bf16.mxu1 %vm2107_vm9, %v2106_v14 }
0x12db   :  { %v784_v11 = vpop.f32.mrb[24].mxu1 }
0x12dc   :  { %v790_v12 = vadd.f32 %v784_v11, %v2218_v61  ;;  %v1840_v13 = vpop.f32.mrb[25].mxu1 }
0x12dd   :  { %v787_v15 = vpop.f32.mrb[26].mxu1 }
0x12de   :  { %1994 = vtanh.f32 %v790_v12  ;;  %v1841_v16 = vpop.f32.mrb[27].mxu1  ;;  %v791_v18 = vmul.f32 0.5, %v790_v12 }
0x12e0   :  { %1996 = vtanh.f32 %v791_v18 }
0x12e8   :  { %v1995_v17 = vpop.eup %1994 }
0x12e9   :  { %798 = vrot.lane.b32.xlu0 %v1995_v17, %s2103_s22 }
0x12ea   :  { %v1997_v19 = vpop.eup %1996 }
0x12eb   :  { %v793_v20 = vmul.f32 0.5, %v1997_v19 }
0x12ed   :  { %v794_v21 = vadd.f32 0.5, %v793_v20 }
0x12ef   :  { %v796_v24 = vmul.f32 %v794_v21, %v736_v54 }
0x135b   :  { %v799_v22 = vpop.permute.xlu0 %798 }
0x135c   :  { %v801_v23 = vmul.f32 %v799_v22, %v794_v21 }
0x135e   :  { %803 = vrot.lane.b32.xlu1 %v801_v23, %s2108_s15 }
0x13d0   :  { %v804_v25 = vpop.permute.xlu1 %803 }
0x13d1   :  { %v806_v26 = vadd.f32 %v804_v25, %v796_v24 }
0x13d3   :  { %1998 = vtanh.f32 %v806_v26 }
0x13dd   :  { %v1999_v61 = vpop.eup %1998 }
0x13de   :  { %809 = vrot.lane.b32.xlu0 %v1999_v61, %s2103_s22 }
0x1450   :  { %v810_v57 = vpop.permute.xlu0 %809 }
0x1451   :  { %v812_v27 = vmul.f32 %v810_v57, %v794_v21 }
0x1453   :  { %v813_v28 = vpack.c.bf16 %v812_v27, %v812_v27 }
0x1455   :  { %815 = vrot.lane.b32.xlu1 %v813_v28, %s2108_s15 }
0x14c7   :  { %v816_v29 = vpop.permute.xlu1 %815 }
0x14c8   :  { %1847 = vmatmul.mubr.msk.bf16.vlgmr.msra.gmra.mrb[16].mxu0 %vm237_vm10, %v816_v29 }
0x14c9   :  { %1862 = vmatprep.mubr.msk.bf16.mxu0 %vm2107_vm9, %v2106_v14  ;;  %1859 = vmatpush3.bf16.msra.mxu0 %v2303_v47 }
0x14ca   :  { %1860 = vmatprep.subr.bf16.mxu0 %v2106_v14 }
0x14cd   :  { %1861 = vmatpush3.bf16.msra.mxu0 %v2306_v48 }
0x14ce   :  { %1874 = vmatprep.subr.bf16.mxu0 %v2106_v14 }
0x14d0   :  { %1863 = vmatmul.mubr.bf16.vlgmr.msra.gmra.mrb[20].mxu0 %v2105_v0 }
0x14d1   :  { %1875 = vmatpush3.bf16.msra.mxu0 %v2303_v47  ;;  %1878 = vmatprep.mubr.msk.bf16.mxu0 %vm2107_vm9, %v2106_v14 }
0x14d2   :  { %1876 = vmatprep.subr.bf16.mxu0 %v2106_v14 }
0x14d5   :  { %1877 = vmatpush3.bf16.msra.mxu0 %v2306_v48 }
0x14d6   :  { %1890 = vmatprep.subr.bf16.mxu0 %v2106_v14 }
0x159b   :  { %v854_v30 = vpop.f32.mrb[16].mxu0 }
0x159c   :  { %v860_v31 = vadd.f32 %v854_v30, %v2222_v2  ;;  %v1848_v32 = vpop.f32.mrb[17].mxu0  ;;  %v1952_v2 = vld [vmem:[#allocation2 + $0x40] sm:$0xff]  }
0x159d   :  { %v857_v33 = vpop.f32.mrb[18].mxu0  ;;  %1851 = vmatpush3.bf16.msra.mxu1 %v1952_v2 }
0x159e   :  { %2000 = vtanh.f32 %v860_v31  ;;  %v1849_v34 = vpop.f32.mrb[19].mxu0  ;;  %v861_v36 = vmul.f32 0.5, %v860_v31  ;;  %1852 = vmatprep.subr.bf16.mxu1 %v2106_v14 }
0x15a0   :  { %2002 = vtanh.f32 %v861_v36 }
0x15a1   :  { %1853 = vmatpush3.bf16.msra.mxu1 %v1954_v63 }
0x15a2   :  { %1866 = vmatprep.subr.bf16.mxu1 %v2106_v14 }
0x15a3   :  { %v992_v53 = vpop.f32.mrb[20].mxu0 }
0x15a4   :  { %v1864_v55 = vpop.f32.mrb[21].mxu0 }
0x15a5   :  { %v995_v56 = vpop.f32.mrb[22].mxu0 }
0x15a6   :  { %v1865_v0 = vpop.f32.mrb[23].mxu0 }
0x15a8   :  { %v2001_v35 = vpop.eup %2000 }
0x15a9   :  { %868 = vrot.lane.b32.xlu0 %v2001_v35, %s2103_s22 }
0x15aa   :  { %v2003_v37 = vpop.eup %2002 }
0x15ab   :  { %v863_v40 = vmul.f32 0.5, %v2003_v37 }
0x15ad   :  { %v864_v41 = vadd.f32 0.5, %v863_v40 }
0x15af   :  { %v866_v44 = vmul.f32 %v864_v41, %v806_v26 }
0x161b   :  { %v869_v42 = vpop.permute.xlu0 %868 }
0x161c   :  { %v871_v43 = vmul.f32 %v869_v42, %v864_v41 }
0x161e   :  { %873 = vrot.lane.b32.xlu1 %v871_v43, %s2108_s15 }
0x1690   :  { %v874_v45 = vpop.permute.xlu1 %873 }
0x1691   :  { %v876_v46 = vadd.f32 %v874_v45, %v866_v44 }
0x1693   :  { %2004 = vtanh.f32 %v876_v46 }
0x169d   :  { %v2005_v49 = vpop.eup %2004 }
0x169e   :  { %879 = vrot.lane.b32.xlu0 %v2005_v49, %s2103_s22 }
0x1710   :  { %v880_v50 = vpop.permute.xlu0 %879 }
0x1711   :  { %v882_v51 = vmul.f32 %v880_v50, %v864_v41 }
0x1713   :  { %v883_v52 = vpack.c.bf16 %v882_v51, %v882_v51 }
0x1715   :  { %889 = vrot.lane.b32.xlu1 %v883_v52, %s2108_s15 }
0x1787   :  { %v890_v58 = vpop.permute.xlu1 %889 }
0x1788   :  { %1855 = vmatmul.mubr.msk.bf16.vlgmr.msra.gmra.mrb[28].mxu1 %vm237_vm10, %v890_v58 }
0x1789   :  { %1867 = vmatpush3.bf16.msra.mxu1 %v2303_v47  ;;  %1870 = vmatprep.mubr.msk.bf16.mxu1 %vm2107_vm9, %v2106_v14 }
0x178a   :  { %1868 = vmatprep.subr.bf16.mxu1 %v2106_v14 }
0x178d   :  { %1869 = vmatpush3.bf16.msra.mxu1 %v2306_v48 }
0x178e   :  { %1882 = vmatprep.subr.bf16.mxu1 %v2106_v14 }
0x185b   :  { %v940_v38 = vpop.f32.mrb[28].mxu1 }
0x185c   :  { %v2332_v60 = vadd.f32 %v1667_v59, %v940_v38  ;;  %v1856_v62 = vpop.f32.mrb[29].mxu1 }
0x185d   :  { %v943_v1 = vpop.f32.mrb[30].mxu1 }
0x185e   :  { %v1857_v3 = vpop.f32.mrb[31].mxu1  ;;  %v998_v5 = vadd.f32 %v992_v53, %v2332_v60 }
0x1860   :  { %2006 = vtanh.f32 %v998_v5  ;;  %v999_v6 = vmul.f32 0.5, %v998_v5 }
0x1862   :  { %2008 = vtanh.f32 %v999_v6 }
0x186a   :  { %v2007_v39 = vpop.eup %2006 }
0x186b   :  { %1006 = vrot.lane.b32.xlu0 %v2007_v39, %s2103_s22 }
0x186c   :  { %v2009_v54 = vpop.eup %2008 }
0x186d   :  { %v1001_v4 = vmul.f32 0.5, %v2009_v54 }
0x186f   :  { %v1002_v7 = vadd.f32 0.5, %v1001_v4 }
0x1871   :  { %v1004_v10 = vmul.f32 0.0, %v1002_v7 }
0x18dd   :  { %v1007_v8 = vpop.permute.xlu0 %1006 }
0x18de   :  { %v1009_v9 = vmul.f32 %v1007_v8, %v1002_v7 }
0x18e0   :  { %1011 = vrot.lane.b32.xlu1 %v1009_v9, %s2108_s15 }
0x1952   :  { %v1012_v11 = vpop.permute.xlu1 %1011 }
0x1953   :  { %v1014_v12 = vadd.f32 %v1012_v11, %v1004_v10 }
0x1955   :  { %2010 = vtanh.f32 %v1014_v12 }
0x195f   :  { %v2011_v13 = vpop.eup %2010 }
0x1960   :  { %1017 = vrot.lane.b32.xlu0 %v2011_v13, %s2103_s22 }
0x19d2   :  { %v1018_v15 = vpop.permute.xlu0 %1017 }
0x19d3   :  { %v2338_v16 = vmul.f32 %v1018_v15, %v1002_v7 }
0x19d5   :  { %v1021_v17 = vpack.c.bf16 %v2338_v16, %v2338_v16 }
0x19d7   :  { %1023 = vrot.lane.b32.xlu1 %v1021_v17, %s2108_s15 }
0x1a49   :  { %v1024_v18 = vpop.permute.xlu1 %1023 }
0x1a4a   :  { %1871 = vmatmul.mubr.msk.bf16.vlgmr.msra.gmra.mrb[32].mxu1 %vm237_vm10, %v1024_v18 }
0x1a4b   :  { %1883 = vmatpush3.bf16.msra.mxu1 %v2303_v47  ;;  %1886 = vmatprep.mubr.msk.bf16.mxu1 %vm2107_vm9, %v2106_v14 }
0x1a4c   :  { %1884 = vmatprep.subr.bf16.mxu1 %v2106_v14 }
0x1a4f   :  { %1885 = vmatpush3.bf16.msra.mxu1 %v2306_v48 }
0x1a50   :  { %1898 = vmatprep.subr.bf16.mxu1 %v2106_v14 }
0x1b1d   :  { %v1062_v19 = vpop.f32.mrb[32].mxu1 }
0x1b1e   :  { %v1068_v20 = vadd.f32 %v1062_v19, %v2332_v60  ;;  %v1872_v21 = vpop.f32.mrb[33].mxu1 }
0x1b1f   :  { %v1065_v22 = vpop.f32.mrb[34].mxu1 }
0x1b20   :  { %2012 = vtanh.f32 %v1068_v20  ;;  %v1873_v23 = vpop.f32.mrb[35].mxu1  ;;  %v1069_v25 = vmul.f32 0.5, %v1068_v20 }
0x1b22   :  { %2014 = vtanh.f32 %v1069_v25 }
0x1b2a   :  { %v2013_v24 = vpop.eup %2012 }
0x1b2b   :  { %1076 = vrot.lane.b32.xlu0 %v2013_v24, %s2103_s22 }
0x1b2c   :  { %v2015_v26 = vpop.eup %2014 }
0x1b2d   :  { %v1071_v61 = vmul.f32 0.5, %v2015_v26 }
0x1b2f   :  { %v1072_v57 = vadd.f32 0.5, %v1071_v61 }
0x1b31   :  { %v1074_v29 = vmul.f32 %v1072_v57, %v1014_v12 }
0x1b9d   :  { %v1077_v27 = vpop.permute.xlu0 %1076 }
0x1b9e   :  { %v1079_v28 = vmul.f32 %v1077_v27, %v1072_v57 }
0x1ba0   :  { %1081 = vrot.lane.b32.xlu1 %v1079_v28, %s2108_s15 }
0x1c12   :  { %v1082_v30 = vpop.permute.xlu1 %1081 }
0x1c13   :  { %v1084_v31 = vadd.f32 %v1082_v30, %v1074_v29 }
0x1c15   :  { %2016 = vtanh.f32 %v1084_v31 }
0x1c1f   :  { %v2017_v32 = vpop.eup %2016 }
0x1c20   :  { %1087 = vrot.lane.b32.xlu0 %v2017_v32, %s2103_s22 }
0x1c92   :  { %v1088_v33 = vpop.permute.xlu0 %1087 }
0x1c93   :  { %v2354_v34 = vmul.f32 %v1088_v33, %v1072_v57 }
0x1c95   :  { %v1091_v35 = vpack.c.bf16 %v2354_v34, %v2354_v34 }
0x1c97   :  { %1093 = vrot.lane.b32.xlu1 %v1091_v35, %s2108_s15 }
0x1d09   :  { %v1094_v36 = vpop.permute.xlu1 %1093 }
0x1d0a   :  { %1879 = vmatmul.mubr.msk.bf16.vlgmr.msra.gmra.mrb[24].mxu0 %vm237_vm10, %v1094_v36 }
0x1d0b   :  { %1891 = vmatpush3.bf16.msra.mxu0 %v2303_v47  ;;  %1894 = vmatprep.mubr.msk.bf16.mxu0 %vm2107_vm9, %v2106_v14 }
0x1d0c   :  { %1892 = vmatprep.subr.bf16.mxu0 %v2106_v14 }
0x1d0f   :  { %1893 = vmatpush3.bf16.msra.mxu0 %v2306_v48 }
0x1d10   :  { %1906 = vmatprep.subr.bf16.mxu0 %v2106_v14 }
0x1ddd   :  { %v1132_v37 = vpop.f32.mrb[24].mxu0 }
0x1dde   :  { %v1138_v40 = vadd.f32 %v1132_v37, %v2332_v60  ;;  %v1880_v41 = vpop.f32.mrb[25].mxu0 }
0x1ddf   :  { %v1135_v42 = vpop.f32.mrb[26].mxu0 }
0x1de0   :  { %2018 = vtanh.f32 %v1138_v40  ;;  %v1881_v43 = vpop.f32.mrb[27].mxu0  ;;  %v1139_v45 = vmul.f32 0.5, %v1138_v40 }
0x1de2   :  { %2020 = vtanh.f32 %v1139_v45 }
0x1dea   :  { %v2019_v44 = vpop.eup %2018 }
0x1deb   :  { %1146 = vrot.lane.b32.xlu0 %v2019_v44, %s2103_s22 }
0x1dec   :  { %v2021_v46 = vpop.eup %2020 }
0x1ded   :  { %v1141_v2 = vmul.f32 0.5, %v2021_v46 }
0x1def   :  { %v1142_v63 = vadd.f32 0.5, %v1141_v2 }
0x1df1   :  { %v1144_v51 = vmul.f32 %v1142_v63, %v1084_v31 }
0x1e5d   :  { %v1147_v49 = vpop.permute.xlu0 %1146 }
0x1e5e   :  { %v1149_v50 = vmul.f32 %v1147_v49, %v1142_v63 }
0x1e60   :  { %1151 = vrot.lane.b32.xlu1 %v1149_v50, %s2108_s15 }
0x1ed2   :  { %v1152_v52 = vpop.permute.xlu1 %1151 }
0x1ed3   :  { %v1154_v53 = vadd.f32 %v1152_v52, %v1144_v51 }
0x1ed5   :  { %2022 = vtanh.f32 %v1154_v53 }
0x1edf   :  { %v2023_v55 = vpop.eup %2022 }
0x1ee0   :  { %1157 = vrot.lane.b32.xlu0 %v2023_v55, %s2103_s22 }
0x1f52   :  { %v1158_v56 = vpop.permute.xlu0 %1157 }
0x1f53   :  { %v2370_v0 = vmul.f32 %v1158_v56, %v1142_v63 }
0x1f55   :  { %v1161_v58 = vpack.c.bf16 %v2370_v0, %v2370_v0 }
0x1f57   :  { %1163 = vrot.lane.b32.xlu1 %v1161_v58, %s2108_s15 }
0x1fc9   :  { %v1164_v59 = vpop.permute.xlu1 %1163 }
0x1fca   :  { %1887 = vmatmul.mubr.msk.bf16.vlgmr.msra.gmra.mrb[36].mxu1 %vm237_vm10, %v1164_v59 }
0x1fcb   :  { %1899 = vmatpush3.bf16.msra.mxu1 %v2303_v47  ;;  %1902 = vmatprep.mubr.msk.bf16.mxu1 %vm2107_vm9, %v2106_v14 }
0x1fcc   :  { %1900 = vmatprep.subr.bf16.mxu1 %v2106_v14 }
0x1fcf   :  { %1901 = vmatpush3.bf16.msra.mxu1 %v2306_v48 }
0x1fd0   :  { %1914 = vmatprep.subr.bf16.mxu1 %v2106_v14 }
0x209d   :  { %v1202_v38 = vpop.f32.mrb[36].mxu1 }
0x209e   :  { %v1208_v62 = vadd.f32 %v1202_v38, %v2332_v60  ;;  %v1888_v1 = vpop.f32.mrb[37].mxu1 }
0x209f   :  { %v1205_v3 = vpop.f32.mrb[38].mxu1 }
0x20a0   :  { %2024 = vtanh.f32 %v1208_v62  ;;  %v1889_v5 = vpop.f32.mrb[39].mxu1  ;;  %v1209_v6 = vmul.f32 0.5, %v1208_v62 }
0x20a2   :  { %2026 = vtanh.f32 %v1209_v6 }
0x20aa   :  { %v2025_v39 = vpop.eup %2024 }
0x20ab   :  { %1216 = vrot.lane.b32.xlu0 %v2025_v39, %s2103_s22 }
0x20ac   :  { %v2027_v54 = vpop.eup %2026 }
0x20ad   :  { %v1211_v4 = vmul.f32 0.5, %v2027_v54 }
0x20af   :  { %v1212_v7 = vadd.f32 0.5, %v1211_v4 }
0x20b1   :  { %v1214_v10 = vmul.f32 %v1212_v7, %v1154_v53 }
0x211d   :  { %v1217_v8 = vpop.permute.xlu0 %1216 }
0x211e   :  { %v1219_v9 = vmul.f32 %v1217_v8, %v1212_v7 }
0x2120   :  { %1221 = vrot.lane.b32.xlu1 %v1219_v9, %s2108_s15 }
0x2192   :  { %v1222_v11 = vpop.permute.xlu1 %1221 }
0x2193   :  { %v1224_v12 = vadd.f32 %v1222_v11, %v1214_v10 }
0x2195   :  { %2028 = vtanh.f32 %v1224_v12 }
0x219f   :  { %v2029_v13 = vpop.eup %2028 }
0x21a0   :  { %1227 = vrot.lane.b32.xlu0 %v2029_v13, %s2103_s22 }
0x2212   :  { %v1228_v15 = vpop.permute.xlu0 %1227 }
0x2213   :  { %v2386_v17 = vmul.f32 %v1228_v15, %v1212_v7 }
0x2215   :  { %v1231_v18 = vpack.c.bf16 %v2386_v17, %v2386_v17 }
0x2217   :  { %1233 = vrot.lane.b32.xlu1 %v1231_v18, %s2108_s15 }
0x2289   :  { %v1234_v19 = vpop.permute.xlu1 %1233 }
0x228a   :  { %1895 = vmatmul.mubr.msk.bf16.vlgmr.msra.gmra.mrb[28].mxu0 %vm237_vm10, %v1234_v19 }
0x228b   :  { %1907 = vmatpush3.bf16.msra.mxu0 %v2303_v47  ;;  %1910 = vmatprep.mubr.msk.bf16.mxu0 %vm2107_vm9, %v2106_v14 }
0x228c   :  { %1908 = vmatprep.subr.bf16.mxu0 %v2106_v14 }
0x228f   :  { %1909 = vmatpush3.bf16.msra.mxu0 %v2306_v48 }
0x235d   :  { %v1272_v20 = vpop.f32.mrb[28].mxu0 }
0x235e   :  { %v1278_v21 = vadd.f32 %v1272_v20, %v2332_v60  ;;  %v1896_v22 = vpop.f32.mrb[29].mxu0 }
0x235f   :  { %v1275_v23 = vpop.f32.mrb[30].mxu0 }
0x2360   :  { %2030 = vtanh.f32 %v1278_v21  ;;  %v1897_v24 = vpop.f32.mrb[31].mxu0  ;;  %v1279_v26 = vmul.f32 0.5, %v1278_v21 }
0x2362   :  { %2032 = vtanh.f32 %v1279_v26 }
0x236a   :  { %v2031_v25 = vpop.eup %2030 }
0x236b   :  { %1286 = vrot.lane.b32.xlu0 %v2031_v25, %s2103_s22 }
0x236c   :  { %v2033_v61 = vpop.eup %2032 }
0x236d   :  { %v1281_v57 = vmul.f32 0.5, %v2033_v61 }
0x236f   :  { %v1282_v27 = vadd.f32 0.5, %v1281_v57 }
0x2371   :  { %v1284_v30 = vmul.f32 %v1282_v27, %v1224_v12 }
0x23dd   :  { %v1287_v28 = vpop.permute.xlu0 %1286 }
0x23de   :  { %v1289_v29 = vmul.f32 %v1287_v28, %v1282_v27 }
0x23e0   :  { %1291 = vrot.lane.b32.xlu1 %v1289_v29, %s2108_s15 }
0x2452   :  { %v1292_v31 = vpop.permute.xlu1 %1291 }
0x2453   :  { %v1294_v32 = vadd.f32 %v1292_v31, %v1284_v30  ;;  %v1511_v31 = vpack.c.bf16 %v2354_v34, %v2338_v16  ;;  %v1512_v34 = vpack.c.bf16 %v2386_v17, %v2370_v0  ;;  %v1680_v0 = vld [vmem:[%s2458_s2 + $0x2] ss:$0 sm:$0xff]  ;;  %s2076_s2 = scalar_lea.vmem %s1635_s21, 1024 }
0x2454   :  { %p2077_p8 = scmp.ne.s32.totalorder %s1635_s21, %s2076_s2  ;;  %p2082_p10 = scmp.lt.s32.totalorder %s2076_s2, %s2076_s2 }
0x2455   :  { %2034 = vtanh.f32 %v1294_v32 }
0x2456   :  { %p2083_p11 = por %p2082_p10, %p2081_p9 }
0x2458   :  { %p2084_p12 = pnand %p2083_p11, %p2077_p8 }
0x245f   :  { %v2035_v33 = vpop.eup %2034 }
0x2460   :  { %1297 = vrot.lane.b32.xlu0 %v2035_v33, %s2103_s22 }
0x24d2   :  { %v1298_v35 = vpop.permute.xlu0 %1297 }
0x24d3   :  { %v2401_v36 = vmul.f32 %v1298_v35, %v1282_v27  ;;  %v1957_v35 = vld [vmem:[#allocation2 + $0x68] sm:$0xff]  }
0x24d5   :  { %v1301_v37 = vpack.c.bf16 %v2401_v36, %v2401_v36 }
0x24d7   :  { %1303 = vrot.lane.b32.xlu1 %v1301_v37, %s2108_s15 }
0x2549   :  { %v1304_v40 = vpop.permute.xlu1 %1303 }
0x254a   :  { %1903 = vmatmul.mubr.msk.bf16.vlgmr.msra.gmra.mrb[40].mxu1 %vm237_vm10, %v1304_v40 }
0x254b   :  { %1915 = vmatpush3.bf16.msra.mxu1 %v2303_v47  ;;  %1918 = vmatprep.mubr.msk.bf16.mxu1 %vm2107_vm9, %v2106_v14 }
0x254c   :  { %1916 = vmatprep.subr.bf16.mxu1 %v2106_v14 }
0x254f   :  { %1917 = vmatpush3.bf16.msra.mxu1 %v2306_v48 }
0x261d   :  { %v1342_v41 = vpop.f32.mrb[40].mxu1 }
0x261e   :  { %v1348_v42 = vadd.f32 %v1342_v41, %v2332_v60  ;;  %v1904_v43 = vpop.f32.mrb[41].mxu1 }
0x261f   :  { %v1345_v44 = vpop.f32.mrb[42].mxu1 }
0x2620   :  { %2036 = vtanh.f32 %v1348_v42  ;;  %v1905_v45 = vpop.f32.mrb[43].mxu1  ;;  %v1349_v2 = vmul.f32 0.5, %v1348_v42 }
0x2622   :  { %2038 = vtanh.f32 %v1349_v2 }
0x262a   :  { %v2037_v46 = vpop.eup %2036 }
0x262b   :  { %1356 = vrot.lane.b32.xlu0 %v2037_v46, %s2103_s22 }
0x262c   :  { %v2039_v47 = vpop.eup %2038 }
0x262d   :  { %v1351_v63 = vmul.f32 0.5, %v2039_v47 }
0x262f   :  { %v1352_v49 = vadd.f32 0.5, %v1351_v63 }
0x2631   :  { %v1354_v14 = vmul.f32 %v1352_v49, %v1294_v32 }
0x269d   :  { %v1357_v50 = vpop.permute.xlu0 %1356 }
0x269e   :  { %v1359_v51 = vmul.f32 %v1357_v50, %v1352_v49 }
0x26a0   :  { %1361 = vrot.lane.b32.xlu1 %v1359_v51, %s2108_s15 }
0x2712   :  { %v1362_v48 = vpop.permute.xlu1 %1361 }
0x2713   :  { %v1364_v52 = vadd.f32 %v1362_v48, %v1354_v14 }
0x2715   :  { %2040 = vtanh.f32 %v1364_v52 }
0x271f   :  { %v2041_v53 = vpop.eup %2040 }
0x2720   :  { %1367 = vrot.lane.b32.xlu0 %v2041_v53, %s2103_s22 }
0x2792   :  { %v1368_v55 = vpop.permute.xlu0 %1367 }
0x2793   :  { %v1370_v56 = vmul.f32 %v1368_v55, %v1352_v49 }
0x2795   :  { %v1371_v58 = vpack.c.bf16 %v1370_v56, %v1370_v56  ;;  %v1513_v32 = vpack.c.bf16 %v1370_v56, %v2401_v36 }
0x2797   :  { %1373 = vrot.lane.b32.xlu1 %v1371_v58, %s2108_s15 }
0x2809   :  { %v1374_v59 = vpop.permute.xlu1 %1373 }
0x280a   :  { %1911 = vmatmul.mubr.msk.bf16.vlgmr.msra.gmra.mrb[32].mxu0 %vm237_vm10, %v1374_v59 }
0x28dd   :  { %v1412_v38 = vpop.f32.mrb[32].mxu0 }
0x28de   :  { %v1418_v62 = vadd.f32 %v1412_v38, %v2332_v60  ;;  %v1912_v1 = vpop.f32.mrb[33].mxu0 }
0x28df   :  { %v1415_v3 = vpop.f32.mrb[34].mxu0 }
0x28e0   :  { %2042 = vtanh.f32 %v1418_v62  ;;  %v1913_v5 = vpop.f32.mrb[35].mxu0  ;;  %v1419_v6 = vmul.f32 0.5, %v1418_v62 }
0x28e2   :  { %2044 = vtanh.f32 %v1419_v6 }
0x28ea   :  { %v2043_v39 = vpop.eup %2042 }
0x28eb   :  { %1426 = vrot.lane.b32.xlu0 %v2043_v39, %s2103_s22 }
0x28ec   :  { %v2045_v54 = vpop.eup %2044 }
0x28ed   :  { %v1421_v4 = vmul.f32 0.5, %v2045_v54 }
0x28ef   :  { %v1422_v7 = vadd.f32 0.5, %v1421_v4 }
0x28f1   :  { %v1424_v10 = vmul.f32 %v1422_v7, %v1364_v52 }
0x295d   :  { %v1427_v8 = vpop.permute.xlu0 %1426 }
0x295e   :  { %v1429_v9 = vmul.f32 %v1427_v8, %v1422_v7 }
0x2960   :  { %1431 = vrot.lane.b32.xlu1 %v1429_v9, %s2108_s15 }
0x29d2   :  { %v1432_v11 = vpop.permute.xlu1 %1431 }
0x29d3   :  { %v1434_v12 = vadd.f32 %v1432_v11, %v1424_v10 }
0x29d5   :  { %2046 = vtanh.f32 %v1434_v12 }
0x29df   :  { %v2047_v13 = vpop.eup %2046 }
0x29e0   :  { %1437 = vrot.lane.b32.xlu0 %v2047_v13, %s2103_s22 }
0x2a52   :  { %v1438_v15 = vpop.permute.xlu0 %1437 }
0x2a53   :  { %v1440_v18 = vmul.f32 %v1438_v15, %v1422_v7 }
0x2a55   :  { %v1441_v19 = vpack.c.bf16 %v1440_v18, %v1440_v18 }
0x2a57   :  { %1443 = vrot.lane.b32.xlu1 %v1441_v19, %s2108_s15 }
0x2ac9   :  { %v1444_v20 = vpop.permute.xlu1 %1443 }
0x2aca   :  { %1919 = vmatmul.mubr.msk.bf16.vlgmr.msra.gmra.mrb[44].mxu1 %vm237_vm10, %v1444_v20 }
0x2b9d   :  { %v1482_v21 = vpop.f32.mrb[44].mxu1 }
0x2b9e   :  { %v1488_v22 = vadd.f32 %v1482_v21, %v2332_v60  ;;  %v1920_v23 = vpop.f32.mrb[45].mxu1  ;;  %v1956_v60 = vld [vmem:[#allocation2 + $0x60] sm:$0xff]  }
0x2b9f   :  { %v1485_v24 = vpop.f32.mrb[46].mxu1  ;;  %1922 = vmatprep.subr.bf16.mxu0 %v1956_v60 }
0x2ba0   :  { %2048 = vtanh.f32 %v1488_v22  ;;  %v1921_v25 = vpop.f32.mrb[47].mxu1  ;;  %v1489_v61 = vmul.f32 0.5, %v1488_v22  ;;  %1923 = vmatpush3.bf16.msra.mxu0 %v1956_v60 }
0x2ba1   :  { %1924 = vmatprep.subr.bf16.mxu0 %v1957_v35 }
0x2ba2   :  { %2050 = vtanh.f32 %v1489_v61 }
0x2ba4   :  { %1925 = vmatpush3.bf16.msra.mxu0 %v1957_v35 }
0x2baa   :  { %v2049_v26 = vpop.eup %2048 }
0x2bab   :  { %1496 = vrot.lane.b32.xlu0 %v2049_v26, %s2103_s22 }
0x2bac   :  { %v2051_v57 = vpop.eup %2050 }
0x2bad   :  { %v1491_v27 = vmul.f32 0.5, %v2051_v57 }
0x2baf   :  { %v1492_v28 = vadd.f32 0.5, %v1491_v27 }
0x2bb1   :  { %v1494_v33 = vmul.f32 %v1492_v28, %v1434_v12 }
0x2c1d   :  { %v1497_v29 = vpop.permute.xlu0 %1496 }
0x2c1e   :  { %v1499_v30 = vmul.f32 %v1497_v29, %v1492_v28 }
0x2c20   :  { %1501 = vrot.lane.b32.xlu1 %v1499_v30, %s2108_s15 }
0x2c24   :  { %1523 = vrot.lane.b32.xlu1 %v1511_v31, %s2108_s15 }
0x2c28   :  { %1527 = vrot.lane.b32.xlu1 %v1513_v32, %s2108_s15 }
0x2c92   :  { %v1502_v37 = vpop.permute.xlu1 %1501 }
0x2c93   :  { %v1504_v40 = vadd.f32 %v1502_v37, %v1494_v33 }
0x2c95   :  { %2052 = vtanh.f32 %v1504_v40 }
0x2c96   :  { %v1524_v41 = vpop.permute.xlu1 %1523 }
0x2c97   :  { %1926 = vmatprep.mubr.msk.bf16.mxu0 %vm237_vm10, %v1524_v41 }
0x2c9a   :  { %v1528_v45 = vpop.permute.xlu1 %1527 }
0x2c9f   :  { %v2053_v16 = vpop.eup %2052 }
0x2ca0   :  { %1507 = vrot.lane.b32.xlu0 %v2053_v16, %s2103_s22 }
0x2ca4   :  { %1525 = vrot.lane.b32.xlu0 %v1512_v34, %s2108_s15 }
0x2d12   :  { %v1508_v36 = vpop.permute.xlu0 %1507 }
0x2d13   :  { %v1510_v42 = vmul.f32 %v1508_v36, %v1492_v28 }
0x2d15   :  { %v1514_v43 = vpack.c.bf16 %v1510_v42, %v1440_v18 }
0x2d16   :  { %v1526_v44 = vpop.permute.xlu0 %1525 }
0x2d17   :  { %1529 = vrot.lane.b32.xlu0 %v1514_v43, %s2108_s15  ;;  %1927 = vmatmul.mubr.msk.bf16.vlgmr.msra.gmra.mrb[36].mxu0 %vm237_vm10, %v1526_v44 }
0x2d18   :  { %1930 = vmatprep.mubr.msk.bf16.mxu0 %vm237_vm10, %v1528_v45 }
0x2d89   :  { %v1530_v46 = vpop.permute.xlu0 %1529 }
0x2d8a   :  { %1931 = vmatmul.mubr.msk.bf16.gmra.mrb[40].mxu0 %vm237_vm10, %v1530_v46 }
0x2dea   :  { %v1928_v17 = vpop.f32.mrb[36].mxu0 }
0x2deb   :  { %v1598_v2 = vadd.f32 %v1928_v17, %v1680_v0  ;;  %v1589_v47 = vpop.f32.mrb[37].mxu0 }
0x2dec   :  { %v1590_v63 = vadd.f32 %v1680_v0, %v1589_v47  ;;  %v1929_v49 = vpop.f32.mrb[38].mxu0 }
0x2ded   :  { %1622 = vst [vmem:[#allocation5 + $0x10] sm:$0xff] %v1598_v2  ;;  %v1601_v50 = vadd.f32 %v1929_v49, %v1680_v0  ;;  %v1592_v51 = vpop.f32.mrb[39].mxu0 }
0x2dee   :  { %1620 = vst [vmem:[#allocation5] sm:$0xff] %v1590_v63  ;;  %v1593_v14 = vadd.f32 %v1680_v0, %v1592_v51 }
0x2def   :  { %1623 = vst [vmem:[#allocation5 + $0x18] sm:$0xff] %v1601_v50 }
0x2df0   :  { %1621 = vst [vmem:[#allocation5 + $0x8] sm:$0xff] %v1593_v14 }
0x2e5d   :  { %v1932_v48 = vpop.f32.mrb[40].mxu0 }
0x2e5e   :  { %v1614_v52 = vadd.f32 %v1932_v48, %v1680_v0  ;;  %v1605_v53 = vpop.f32.mrb[41].mxu0 }
0x2e5f   :  { %v1606_v55 = vadd.f32 %v1680_v0, %v1605_v53  ;;  %v1933_v56 = vpop.f32.mrb[42].mxu0 }
0x2e60   :  { %1626 = vst [vmem:[#allocation5 + $0x30] sm:$0xff] %v1614_v52  ;;  %v1617_v58 = vadd.f32 %v1933_v56, %v1680_v0  ;;  %v1608_v59 = vpop.f32.mrb[43].mxu0 }
0x2e61   :  { %1624 = vst [vmem:[#allocation5 + $0x20] sm:$0xff] %v1606_v55  ;;  %v1609_v38 = vadd.f32 %v1680_v0, %v1608_v59 }
0x2e62   :  { %1627 = vst [vmem:[#allocation5 + $0x38] sm:$0xff] %v1617_v58 }
0x2e63   :  { %1625 = vst [vmem:[#allocation5 + $0x28] sm:$0xff] %v1609_v38 }
0x2e64   :  { %2087 = shalt.err (!%p2084_p12)
}
0x2e65   :  { %s2088_s24 = scalar_lea.hbm %s2459_s3, 1024 }
0x2e66   :  { %p2089_p13 = scmp.ne.s32.totalorder %s2459_s3, %s2088_s24  ;;  %p2092_p0 = scmp.lt.u32.totalorder %s2088_s24, %s2459_s3 }
0x2e68   :  { %p2094_p1 = pnand %p2092_p0, %p2089_p13 }
0x2e6a   :  { %2097 = shalt.err (!%p2094_p1)
}
0x2e6b   :  { %1637 = dma.vmem_to_hbm [thread:$0]  %s1635_s21, 1024, %s2459_s3, [#allocation4]  }
0x2e6c   :  { %2100 = dma.done.wait [#allocation4], 1024  }
0x2e6d   :  { %2101 = vsyncadd [#allocation4], 4294966272 }
0x2e6e   :  { %1641 = vsyncpa [#allocation3], 1 }
0x2e6f   :  { %1642 = vsyncpa [#allocation4], 1 }

</bundles_post_ra>
